<compile_context>
chip_gen: v6e
topology: v6e:2x2x1
jax: 0.10.0
libtpu: 0.0.40
codegen_flags: <defaults>
</compile_context>

<pallas_src>
import functools

import jax
import jax.numpy as jnp
from jax import lax
from jax.experimental import pallas as pl
from jax.experimental.pallas import tpu as pltpu


def bottleneck_kernel(xpad_ref, w1_ref, w2r_ref, w3_ref,
                      s1_ref, b1_ref, s2_ref, b2_ref, s3_ref, b3_ref,
                      out_ref, h1pad_ref):
    """One (batch-element, row-block) tile of the bottleneck block.

    xpad_ref  : (1, H+2, W+2, Cin) f32   spatially zero-padded input (resident per n)
    w1_ref    : (Cin, P)            bf16 1x1 conv
    w2r_ref   : (3, 3*P, P)         bf16 3x3 conv, rows flattened over (dx, cin)
    w3_ref    : (P, Cout)           bf16 1x1 conv, Cout = 4*P
    s*_ref    : (1, C) f32          folded BN scale
    b*_ref    : (1, C) f32          folded BN bias
    out_ref   : (1, TH, W, Cout) f32
    h1pad_ref : (TH+2, W+2, P) bf16 VMEM scratch: padded conv2 input window
    """
    j = pl.program_id(1)
    _, TH, W, Cout = out_ref.shape
    _, Hp2, Wp2, Cin = xpad_ref.shape
    H = Hp2 - 2
    P = w1_ref.shape[1]

    # First padded row of this block's halo window: rows [j*TH, j*TH + TH + 2).
    row0 = pl.multiple_of(j * TH, TH)

    # ---- conv1 (1x1) + bn1 + relu over the (TH+2)-row halo window ----------
    xwin = xpad_ref[0, pl.ds(row0, TH + 2), :, :]                 # (TH+2, W+2, Cin) f32
    xm = xwin.reshape((TH + 2) * Wp2, Cin).astype(jnp.bfloat16)
    h1 = jnp.dot(xm, w1_ref[...], preferred_element_type=jnp.float32)
    h1 = jnp.maximum(h1 * s1_ref[...] + b1_ref[...], 0.0)
    h1 = h1.reshape(TH + 2, Wp2, P)

    # conv2's zero padding applies to h1 (not x): zero the window positions
    # that correspond to spatial padding -- columns 0 / W+1 always, and image
    # rows 0 / H+1 (these only appear in the first / last row block).
    row = lax.broadcasted_iota(jnp.int32, (TH + 2, Wp2, P), 0) + row0
    col = lax.broadcasted_iota(jnp.int32, (TH + 2, Wp2, P), 1)
    pad_mask = (row == 0) | (row == H + 1) | (col == 0) | (col == Wp2 - 1)
    h1pad_ref[...] = jnp.where(pad_mask, 0.0, h1).astype(jnp.bfloat16)

    # ---- conv2 (3x3, pad=1, stride=1): 3 fat matmuls with K = 3*P ----------
    def dy_window(dy):
        rows = h1pad_ref[dy:dy + TH, :, :]                        # (TH, W+2, P) bf16
        win = jnp.concatenate(
            [rows[:, 0:W, :], rows[:, 1:W + 1, :], rows[:, 2:W + 2, :]],
            axis=-1)                                              # (TH, W, 3P)
        return win.reshape(TH * W, 3 * P)

    acc = jnp.dot(dy_window(0), w2r_ref[0], preferred_element_type=jnp.float32)
    acc = acc + jnp.dot(dy_window(1), w2r_ref[1], preferred_element_type=jnp.float32)
    acc = acc + jnp.dot(dy_window(2), w2r_ref[2], preferred_element_type=jnp.float32)

    # bn2 + relu
    h2 = jnp.maximum(acc * s2_ref[...] + b2_ref[...], 0.0)        # (TH*W, P) f32

    # ---- conv3 (1x1) + bn3 --------------------------------------------------
    h3 = jnp.dot(h2.astype(jnp.bfloat16), w3_ref[...],
                 preferred_element_type=jnp.float32)
    h3 = h3 * s3_ref[...] + b3_ref[...]                           # (TH*W, Cout)

    # ---- residual add (f32, read from the resident input) + final relu -----
    res = xpad_ref[0, pl.ds(row0 + 1, TH), pl.ds(1, W), :]        # (TH, W, Cin) f32
    out_ref[0] = jnp.maximum(h3.reshape(TH, W, Cout) + res, 0.0)


def fold_bn(gamma, beta, mean, var, eps=1e-5):
    scale = gamma / jnp.sqrt(var + eps)
    bias = beta - mean * scale
    return scale, bias


def _pick_row_tile(H, W, Cin, P, Cout, vmem_budget_bytes=12 * 2**20):
    """Largest divisor of H whose per-block working set fits the budget.

    Budget is conservative for v7x (64 MiB physical VMEM, 32 MiB scoped);
    on v5e/v6e (128 MiB) the same choice simply leaves extra headroom.
    """
    per_row = ((W + 2) * P * (4 + 2)       # h1 halo window (f32 value + bf16 scratch)
               + W * P * 4                 # conv2 accumulator / h2
               + 2 * W * Cout * 4          # double-buffered output tile
               + W * 3 * P * 2)            # concatenated conv2 operand (bf16)
    max_rows = max(1, vmem_budget_bytes // max(per_row, 1))
    th = 1
    for d in range(1, H + 1):
        if H % d == 0 and d <= max_rows and d <= 64:
            th = d
    return th


@functools.partial(jax.jit, static_argnames=("row_tile",))
def bottleneck_pallas(x_nchw, w1, w2, w3, s1, b1, s2, b2, s3, b3, row_tile=None):
    # TODO(synk): in a full network keep activations NHWC end-to-end so these
    # two transposes (a full HBM read+write each) disappear.
    x = jnp.transpose(x_nchw, (0, 2, 3, 1)).astype(jnp.float32)   # NCHW -> NHWC
    N, H, W, Cin = x.shape
    P = w1.shape[1]
    Cout = w3.shape[1]
    if Cin != Cout:
        # TODO(synk): downsample / stride != 1 Bottleneck variants not implemented.
        raise NotImplementedError("identity residual requires inplanes == 4*planes")

    TH = row_tile if row_tile is not None else _pick_row_tile(H, W, Cin, P, Cout)
    if H % TH != 0:
        raise ValueError(f"row_tile {TH} must divide H {H}")
    n_rb = H // TH

    # Spatially zero-padded input: supplies the +-1 row/col halo for conv2 and
    # the residual interior.  (conv2's own zero padding is applied to h1
    # inside the kernel; the padded x rows/cols are masked out of h1 there.)
    xpad = jnp.pad(x, ((0, 0), (1, 1), (1, 1), (0, 0)))

    # Weights in bf16 (MXU-native); 3x3 kernel pre-reshaped so conv2 becomes
    # 3 fat matmuls with K = 3*P.  Scale/bias reshaped here, not in-kernel.
    w1b = w1.astype(jnp.bfloat16)
    w2r = w2.astype(jnp.bfloat16).reshape(3, 3 * P, P)
    w3b = w3.astype(jnp.bfloat16)
    s1r = s1.reshape(1, P).astype(jnp.float32)
    b1r = b1.reshape(1, P).astype(jnp.float32)
    s2r = s2.reshape(1, P).astype(jnp.float32)
    b2r = b2.reshape(1, P).astype(jnp.float32)
    s3r = s3.reshape(1, Cout).astype(jnp.float32)
    b3r = b3.reshape(1, Cout).astype(jnp.float32)

    flops = 2 * N * H * W * (Cin * P + 9 * P * P + P * Cout)
    bytes_accessed = (xpad.size * 4 + N * H * W * Cout * 4
                      + (w1b.size + w2r.size + w3b.size) * 2
                      + 4 * (2 * P + Cout) * 4)

    grid_spec = pltpu.PrefetchScalarGridSpec(
        num_scalar_prefetch=0,
        grid=(N, n_rb),
        in_specs=[
            # Padded input image: resident per batch element (index constant over j).
            pl.BlockSpec((1, H + 2, W + 2, Cin), lambda n, j: (n, 0, 0, 0)),
            # Weights / folded-BN params: grid-invariant, fetched once.
            pl.BlockSpec((Cin, P), lambda n, j: (0, 0)),
            pl.BlockSpec((3, 3 * P, P), lambda n, j: (0, 0, 0)),
            pl.BlockSpec((P, Cout), lambda n, j: (0, 0)),
            pl.BlockSpec((1, P), lambda n, j: (0, 0)),
            pl.BlockSpec((1, P), lambda n, j: (0, 0)),
            pl.BlockSpec((1, P), lambda n, j: (0, 0)),
            pl.BlockSpec((1, P), lambda n, j: (0, 0)),
            pl.BlockSpec((1, Cout), lambda n, j: (0, 0)),
            pl.BlockSpec((1, Cout), lambda n, j: (0, 0)),
        ],
        out_specs=pl.BlockSpec((1, TH, W, Cout), lambda n, j: (n, j, 0, 0)),
        scratch_shapes=[pltpu.VMEM((TH + 2, W + 2, P), jnp.bfloat16)],
    )

    out = pl.pallas_call(
        bottleneck_kernel,
        out_shape=jax.ShapeDtypeStruct((N, H, W, Cout), jnp.float32),
        grid_spec=grid_spec,
        compiler_params=pltpu.CompilerParams(
            dimension_semantics=("parallel", "parallel"),
            vmem_limit_bytes=32 * 1024 * 1024,
        ),
        cost_estimate=pl.CostEstimate(
            flops=flops, transcendentals=0, bytes_accessed=bytes_accessed),
    )(xpad, w1b, w2r, w3b, s1r, b1r, s2r, b2r, s3r, b3r)

    return jnp.transpose(out, (0, 3, 1, 2))                        # NHWC -> NCHW


def bottleneck_reference(x_nchw, w1, w2, w3, s1, b1, s2, b2, s3, b3):
    """Pure-JAX f32 reference (same math via lax.conv) for correctness check."""
    x = jnp.transpose(x_nchw, (0, 2, 3, 1)).astype(jnp.float32)
    h = jnp.einsum('nhwc,cd->nhwd', x, w1) * s1 + b1
    h = jnp.maximum(h, 0.0)
    h = lax.conv_general_dilated(h, w2, (1, 1), [(1, 1), (1, 1)],
                                 dimension_numbers=('NHWC', 'HWIO', 'NHWC'))
    h = jnp.maximum(h * s2 + b2, 0.0)
    h = jnp.einsum('nhwc,cd->nhwd', h, w3) * s3 + b3
    out = jnp.maximum(h + x, 0.0)
    return jnp.transpose(out, (0, 3, 1, 2))


if __name__ == "__main__":
    key = jax.random.PRNGKey(0)
    ks = jax.random.split(key, 16)

    # Module hyperparams: inplanes = planes * expansion so the identity
    # residual (downsample=None, stride=1) is shape-compatible.
    planes = 4
    inplanes = planes * 4          # 16
    N, H, W = 2, 16, 16

    # Input (NCHW, like PyTorch)
    x = jax.random.normal(ks[0], (N, inplanes, H, W), dtype=jnp.float32)

    # Conv weights (stored ready for NHWC math):
    #   conv1: 1x1 (Cin, P); conv2: 3x3 HWIO (3,3,P,P); conv3: 1x1 (P, 4P)
    w1 = 0.1 * jax.random.normal(ks[1], (inplanes, planes), dtype=jnp.float32)
    w2 = 0.1 * jax.random.normal(ks[2], (3, 3, planes, planes), dtype=jnp.float32)
    w3 = 0.1 * jax.random.normal(ks[3], (planes, planes * 4), dtype=jnp.float32)

    # BatchNorm params / running stats (eval mode), folded to scale/bias.
    def bn_params(kg, kb, km, kv, c):
        gamma = 1.0 + 0.1 * jax.random.normal(kg, (c,), dtype=jnp.float32)
        beta = 0.1 * jax.random.normal(kb, (c,), dtype=jnp.float32)
        mean = 0.1 * jax.random.normal(km, (c,), dtype=jnp.float32)
        var = 1.0 + 0.05 * jax.random.uniform(kv, (c,), dtype=jnp.float32)
        return fold_bn(gamma, beta, mean, var, eps=1e-5)

    s1, b1 = bn_params(ks[4], ks[5], ks[6], ks[7], planes)
    s2, b2 = bn_params(ks[8], ks[9], ks[10], ks[11], planes)
    s3, b3 = bn_params(ks[12], ks[13], ks[14], ks[15], planes * 4)

    # row_tile=4 -> 4 row blocks per image: exercises halo handling at the top,
    # bottom, and interior tile seams.
    out = bottleneck_pallas(x, w1, w2, w3, s1, b1, s2, b2, s3, b3, row_tile=4)
    out = jax.block_until_ready(out)

    ref = bottleneck_reference(x, w1, w2, w3, s1, b1, s2, b2, s3, b3)
    assert out.shape == (N, inplanes, H, W)
    # Kernel uses bf16 MXU operands with f32 accumulation; compare against the
    # f32 reference with a bf16-appropriate tolerance.
    assert jnp.allclose(out, ref, atol=3e-2, rtol=2e-2), "mismatch vs reference"

    print("KERNEL_OK")
</pallas_src>

<mosaic_0001>
module attributes {stable_mosaic.version = 11 : i64} {
  func.func @bottleneck_kernel(%arg0: i32, %arg1: i32, %arg2: memref<1x18x18x16xf32, #tpu.memory_space<vmem>>, %arg3: memref<16x4xbf16, #tpu.memory_space<vmem>>, %arg4: memref<3x12x4xbf16, #tpu.memory_space<vmem>>, %arg5: memref<4x16xbf16, #tpu.memory_space<vmem>>, %arg6: memref<1x4xf32, #tpu.memory_space<vmem>>, %arg7: memref<1x4xf32, #tpu.memory_space<vmem>>, %arg8: memref<1x4xf32, #tpu.memory_space<vmem>>, %arg9: memref<1x4xf32, #tpu.memory_space<vmem>>, %arg10: memref<1x16xf32, #tpu.memory_space<vmem>>, %arg11: memref<1x16xf32, #tpu.memory_space<vmem>>, %arg12: memref<1x4x16x16xf32, #tpu.memory_space<vmem>>, %arg13: memref<6x18x4xbf16, #tpu.memory_space<vmem>>) attributes {dimension_semantics = [#tpu.dimension_semantics<parallel>, #tpu.dimension_semantics<parallel>], iteration_bounds = array<i64: 2, 4>, scalar_prefetch = 0 : i64, scratch_operands = 1 : i64, tpu.core_type = #tpu.core_type<tc>, window_params = [{transform_indices = @transform_0, window_bounds = array<i64: 1, 18, 18, 16>}, {pipeline_mode = #tpu.pipeline_mode<synchronous>, transform_indices = @transform_1, window_bounds = array<i64: 16, 4>}, {pipeline_mode = #tpu.pipeline_mode<synchronous>, transform_indices = @transform_2, window_bounds = array<i64: 3, 12, 4>}, {pipeline_mode = #tpu.pipeline_mode<synchronous>, transform_indices = @transform_3, window_bounds = array<i64: 4, 16>}, {pipeline_mode = #tpu.pipeline_mode<synchronous>, transform_indices = @transform_4, window_bounds = array<i64: 1, 4>}, {pipeline_mode = #tpu.pipeline_mode<synchronous>, transform_indices = @transform_5, window_bounds = array<i64: 1, 4>}, {pipeline_mode = #tpu.pipeline_mode<synchronous>, transform_indices = @transform_6, window_bounds = array<i64: 1, 4>}, {pipeline_mode = #tpu.pipeline_mode<synchronous>, transform_indices = @transform_7, window_bounds = array<i64: 1, 4>}, {pipeline_mode = #tpu.pipeline_mode<synchronous>, transform_indices = @transform_8, window_bounds = array<i64: 1, 16>}, {pipeline_mode = #tpu.pipeline_mode<synchronous>, transform_indices = @transform_9, window_bounds = array<i64: 1, 16>}, {transform_indices = @transform_10, window_bounds = array<i64: 1, 4, 16, 16>}]} {
    %c4_i32 = arith.constant 4 : i32
    %0 = arith.muli %arg1, %c4_i32 : i32
    %1 = tpu.assume_multiple %0, 4 : i32
    %c0 = arith.constant 0 : index
    %2 = arith.index_cast %1 : i32 to index
    %c0_0 = arith.constant 0 : index
    %c0_1 = arith.constant 0 : index
    %3 = vector.load %arg2[%c0, %2, %c0_0, %c0_1] : memref<1x18x18x16xf32, #tpu.memory_space<vmem>>, vector<1x6x18x16xf32>
    %4 = vector.shape_cast %3 : vector<1x6x18x16xf32> to vector<6x18x16xf32>
    %5 = vector.shape_cast %4 : vector<6x18x16xf32> to vector<108x16xf32>
    %6 = arith.truncf %5 : vector<108x16xf32> to vector<108x16xbf16>
    %c0_2 = arith.constant 0 : index
    %c0_3 = arith.constant 0 : index
    %7 = vector.load %arg3[%c0_2, %c0_3] : memref<16x4xbf16, #tpu.memory_space<vmem>>, vector<16x4xbf16>
    %cst = arith.constant dense<0.000000e+00> : vector<108x4xf32>
    %8 = tpu.matmul %6, %7, %cst {dimension_numbers = #tpu.dot_dimension_numbers<[1], [0], [0], [1], [0, 0, 1, 1], [], []>} : vector<108x16xbf16>, vector<16x4xbf16>, vector<108x4xf32> -> vector<108x4xf32>
    %c0_4 = arith.constant 0 : index
    %c0_5 = arith.constant 0 : index
    %9 = vector.load %arg6[%c0_4, %c0_5] : memref<1x4xf32, #tpu.memory_space<vmem>>, vector<1x4xf32>
    %10 = vector.broadcast %9 : vector<1x4xf32> to vector<108x4xf32>
    %11 = arith.mulf %8, %10 : vector<108x4xf32>
    %c0_6 = arith.constant 0 : index
    %c0_7 = arith.constant 0 : index
    %12 = vector.load %arg7[%c0_6, %c0_7] : memref<1x4xf32, #tpu.memory_space<vmem>>, vector<1x4xf32>
    %13 = vector.broadcast %12 : vector<1x4xf32> to vector<108x4xf32>
    %14 = arith.addf %11, %13 : vector<108x4xf32>
    %cst_8 = arith.constant 0.000000e+00 : f32
    %15 = vector.broadcast %cst_8 : f32 to vector<108x4xf32>
    %16 = arith.maximumf %14, %15 : vector<108x4xf32>
    %17 = vector.shape_cast %16 : vector<108x4xf32> to vector<6x18x4xf32>
    %18 = tpu.iota {dimensions = array<i32: 0>} : vector<6x18x4xi32>
    %19 = vector.broadcast %1 : i32 to vector<6x18x4xi32>
    %20 = arith.addi %18, %19 : vector<6x18x4xi32>
    %21 = tpu.iota {dimensions = array<i32: 1>} : vector<6x18x4xi32>
    %c0_i32 = arith.constant 0 : i32
    %22 = vector.broadcast %c0_i32 : i32 to vector<6x18x4xi32>
    %23 = arith.cmpi eq, %20, %22 : vector<6x18x4xi32>
    %c17_i32 = arith.constant 17 : i32
    %24 = vector.broadcast %c17_i32 : i32 to vector<6x18x4xi32>
    %25 = arith.cmpi eq, %20, %24 : vector<6x18x4xi32>
    %26 = arith.ori %23, %25 : vector<6x18x4xi1>
    %c0_i32_9 = arith.constant 0 : i32
    %27 = vector.broadcast %c0_i32_9 : i32 to vector<6x18x4xi32>
    %28 = arith.cmpi eq, %21, %27 : vector<6x18x4xi32>
    %29 = arith.ori %26, %28 : vector<6x18x4xi1>
    %c17_i32_10 = arith.constant 17 : i32
    %30 = vector.broadcast %c17_i32_10 : i32 to vector<6x18x4xi32>
    %31 = arith.cmpi eq, %21, %30 : vector<6x18x4xi32>
    %32 = arith.ori %29, %31 : vector<6x18x4xi1>
    %cst_11 = arith.constant 0.000000e+00 : f32
    %33 = vector.broadcast %cst_11 : f32 to vector<6x18x4xf32>
    %34 = arith.select %32, %33, %17 : vector<6x18x4xi1>, vector<6x18x4xf32>
    %35 = arith.truncf %34 : vector<6x18x4xf32> to vector<6x18x4xbf16>
    %c0_12 = arith.constant 0 : index
    %c0_13 = arith.constant 0 : index
    %c0_14 = arith.constant 0 : index
    %36 = vector.load %arg13[%c0_12, %c0_13, %c0_14] : memref<6x18x4xbf16, #tpu.memory_space<vmem>>, vector<6x18x4xbf16>
    tpu.vector_store %arg13[%c0_12, %c0_13, %c0_14], %35 {strides = array<i32>} : memref<6x18x4xbf16, #tpu.memory_space<vmem>>, vector<6x18x4xbf16>,
    %c0_15 = arith.constant 0 : index
    %c0_16 = arith.constant 0 : index
    %c0_17 = arith.constant 0 : index
    %37 = vector.load %arg13[%c0_15, %c0_16, %c0_17] : memref<6x18x4xbf16, #tpu.memory_space<vmem>>, vector<4x18x4xbf16>
    %38 = vector.extract_strided_slice %37 {offsets = [0, 0, 0], sizes = [4, 16, 4], strides = [1, 1, 1]} : vector<4x18x4xbf16> to vector<4x16x4xbf16>
    %39 = vector.extract_strided_slice %37 {offsets = [0, 1, 0], sizes = [4, 16, 4], strides = [1, 1, 1]} : vector<4x18x4xbf16> to vector<4x16x4xbf16>
    %40 = vector.extract_strided_slice %37 {offsets = [0, 2, 0], sizes = [4, 16, 4], strides = [1, 1, 1]} : vector<4x18x4xbf16> to vector<4x16x4xbf16>
    %41 = tpu.concatenate %38, %39, %40 in 2 : vector<4x16x4xbf16>, vector<4x16x4xbf16>, vector<4x16x4xbf16> -> vector<4x16x12xbf16>
    %42 = vector.shape_cast %41 : vector<4x16x12xbf16> to vector<64x12xbf16>
    %c0_18 = arith.constant 0 : index
    %c0_19 = arith.constant 0 : index
    %c0_20 = arith.constant 0 : index
    %43 = vector.load %arg4[%c0_18, %c0_19, %c0_20] : memref<3x12x4xbf16, #tpu.memory_space<vmem>>, vector<1x12x4xbf16>
    %44 = vector.shape_cast %43 : vector<1x12x4xbf16> to vector<12x4xbf16>
    %cst_21 = arith.constant dense<0.000000e+00> : vector<64x4xf32>
    %45 = tpu.matmul %42, %44, %cst_21 {dimension_numbers = #tpu.dot_dimension_numbers<[1], [0], [0], [1], [0, 0, 1, 1], [], []>} : vector<64x12xbf16>, vector<12x4xbf16>, vector<64x4xf32> -> vector<64x4xf32>
    %c1 = arith.constant 1 : index
    %c0_22 = arith.constant 0 : index
    %c0_23 = arith.constant 0 : index
    %46 = vector.load %arg13[%c1, %c0_22, %c0_23] : memref<6x18x4xbf16, #tpu.memory_space<vmem>>, vector<4x18x4xbf16>
    %47 = vector.extract_strided_slice %46 {offsets = [0, 0, 0], sizes = [4, 16, 4], strides = [1, 1, 1]} : vector<4x18x4xbf16> to vector<4x16x4xbf16>
    %48 = vector.extract_strided_slice %46 {offsets = [0, 1, 0], sizes = [4, 16, 4], strides = [1, 1, 1]} : vector<4x18x4xbf16> to vector<4x16x4xbf16>
    %49 = vector.extract_strided_slice %46 {offsets = [0, 2, 0], sizes = [4, 16, 4], strides = [1, 1, 1]} : vector<4x18x4xbf16> to vector<4x16x4xbf16>
    %50 = tpu.concatenate %47, %48, %49 in 2 : vector<4x16x4xbf16>, vector<4x16x4xbf16>, vector<4x16x4xbf16> -> vector<4x16x12xbf16>
    %51 = vector.shape_cast %50 : vector<4x16x12xbf16> to vector<64x12xbf16>
    %c1_24 = arith.constant 1 : index
    %c0_25 = arith.constant 0 : index
    %c0_26 = arith.constant 0 : index
    %52 = vector.load %arg4[%c1_24, %c0_25, %c0_26] : memref<3x12x4xbf16, #tpu.memory_space<vmem>>, vector<1x12x4xbf16>
    %53 = vector.shape_cast %52 : vector<1x12x4xbf16> to vector<12x4xbf16>
    %cst_27 = arith.constant dense<0.000000e+00> : vector<64x4xf32>
    %54 = tpu.matmul %51, %53, %cst_27 {dimension_numbers = #tpu.dot_dimension_numbers<[1], [0], [0], [1], [0, 0, 1, 1], [], []>} : vector<64x12xbf16>, vector<12x4xbf16>, vector<64x4xf32> -> vector<64x4xf32>
    %55 = arith.addf %45, %54 : vector<64x4xf32>
    %c2 = arith.constant 2 : index
    %c0_28 = arith.constant 0 : index
    %c0_29 = arith.constant 0 : index
    %56 = vector.load %arg13[%c2, %c0_28, %c0_29] : memref<6x18x4xbf16, #tpu.memory_space<vmem>>, vector<4x18x4xbf16>
    %57 = vector.extract_strided_slice %56 {offsets = [0, 0, 0], sizes = [4, 16, 4], strides = [1, 1, 1]} : vector<4x18x4xbf16> to vector<4x16x4xbf16>
    %58 = vector.extract_strided_slice %56 {offsets = [0, 1, 0], sizes = [4, 16, 4], strides = [1, 1, 1]} : vector<4x18x4xbf16> to vector<4x16x4xbf16>
    %59 = vector.extract_strided_slice %56 {offsets = [0, 2, 0], sizes = [4, 16, 4], strides = [1, 1, 1]} : vector<4x18x4xbf16> to vector<4x16x4xbf16>
    %60 = tpu.concatenate %57, %58, %59 in 2 : vector<4x16x4xbf16>, vector<4x16x4xbf16>, vector<4x16x4xbf16> -> vector<4x16x12xbf16>
    %61 = vector.shape_cast %60 : vector<4x16x12xbf16> to vector<64x12xbf16>
    %c2_30 = arith.constant 2 : index
    %c0_31 = arith.constant 0 : index
    %c0_32 = arith.constant 0 : index
    %62 = vector.load %arg4[%c2_30, %c0_31, %c0_32] : memref<3x12x4xbf16, #tpu.memory_space<vmem>>, vector<1x12x4xbf16>
    %63 = vector.shape_cast %62 : vector<1x12x4xbf16> to vector<12x4xbf16>
    %cst_33 = arith.constant dense<0.000000e+00> : vector<64x4xf32>
    %64 = tpu.matmul %61, %63, %cst_33 {dimension_numbers = #tpu.dot_dimension_numbers<[1], [0], [0], [1], [0, 0, 1, 1], [], []>} : vector<64x12xbf16>, vector<12x4xbf16>, vector<64x4xf32> -> vector<64x4xf32>
    %65 = arith.addf %55, %64 : vector<64x4xf32>
    %c0_34 = arith.constant 0 : index
    %c0_35 = arith.constant 0 : index
    %66 = vector.load %arg8[%c0_34, %c0_35] : memref<1x4xf32, #tpu.memory_space<vmem>>, vector<1x4xf32>
    %67 = vector.broadcast %66 : vector<1x4xf32> to vector<64x4xf32>
    %68 = arith.mulf %65, %67 : vector<64x4xf32>
    %c0_36 = arith.constant 0 : index
    %c0_37 = arith.constant 0 : index
    %69 = vector.load %arg9[%c0_36, %c0_37] : memref<1x4xf32, #tpu.memory_space<vmem>>, vector<1x4xf32>
    %70 = vector.broadcast %69 : vector<1x4xf32> to vector<64x4xf32>
    %71 = arith.addf %68, %70 : vector<64x4xf32>
    %cst_38 = arith.constant 0.000000e+00 : f32
    %72 = vector.broadcast %cst_38 : f32 to vector<64x4xf32>
    %73 = arith.maximumf %71, %72 : vector<64x4xf32>
    %74 = arith.truncf %73 : vector<64x4xf32> to vector<64x4xbf16>
    %c0_39 = arith.constant 0 : index
    %c0_40 = arith.constant 0 : index
    %75 = vector.load %arg5[%c0_39, %c0_40] : memref<4x16xbf16, #tpu.memory_space<vmem>>, vector<4x16xbf16>
    %cst_41 = arith.constant dense<0.000000e+00> : vector<64x16xf32>
    %76 = tpu.matmul %74, %75, %cst_41 {dimension_numbers = #tpu.dot_dimension_numbers<[1], [0], [0], [1], [0, 0, 1, 1], [], []>} : vector<64x4xbf16>, vector<4x16xbf16>, vector<64x16xf32> -> vector<64x16xf32>
    %c0_42 = arith.constant 0 : index
    %c0_43 = arith.constant 0 : index
    %77 = vector.load %arg10[%c0_42, %c0_43] : memref<1x16xf32, #tpu.memory_space<vmem>>, vector<1x16xf32>
    %78 = vector.broadcast %77 : vector<1x16xf32> to vector<64x16xf32>
    %79 = arith.mulf %76, %78 : vector<64x16xf32>
    %c0_44 = arith.constant 0 : index
    %c0_45 = arith.constant 0 : index
    %80 = vector.load %arg11[%c0_44, %c0_45] : memref<1x16xf32, #tpu.memory_space<vmem>>, vector<1x16xf32>
    %81 = vector.broadcast %80 : vector<1x16xf32> to vector<64x16xf32>
    %82 = arith.addf %79, %81 : vector<64x16xf32>
    %c1_i32 = arith.constant 1 : i32
    %83 = arith.addi %1, %c1_i32 : i32
    %c0_46 = arith.constant 0 : index
    %84 = arith.index_cast %83 : i32 to index
    %c1_47 = arith.constant 1 : index
    %c0_48 = arith.constant 0 : index
    %85 = vector.load %arg2[%c0_46, %84, %c1_47, %c0_48] : memref<1x18x18x16xf32, #tpu.memory_space<vmem>>, vector<1x4x16x16xf32>
    %86 = vector.shape_cast %85 : vector<1x4x16x16xf32> to vector<4x16x16xf32>
    %87 = vector.shape_cast %82 : vector<64x16xf32> to vector<4x16x16xf32>
    %88 = arith.addf %87, %86 : vector<4x16x16xf32>
    %cst_49 = arith.constant 0.000000e+00 : f32
    %89 = vector.broadcast %cst_49 : f32 to vector<4x16x16xf32>
    %90 = arith.maximumf %88, %89 : vector<4x16x16xf32>
    %c0_50 = arith.constant 0 : index
    %c0_51 = arith.constant 0 : index
    %c0_52 = arith.constant 0 : index
    %c0_53 = arith.constant 0 : index
    %91 = vector.load %arg12[%c0_50, %c0_51, %c0_52, %c0_53] : memref<1x4x16x16xf32, #tpu.memory_space<vmem>>, vector<1x4x16x16xf32>
    %92 = vector.shape_cast %91 : vector<1x4x16x16xf32> to vector<4x16x16xf32>
    %93 = vector.shape_cast %90 : vector<4x16x16xf32> to vector<1x4x16x16xf32>
    tpu.vector_store %arg12[%c0_50, %c0_51, %c0_52, %c0_53], %93 {strides = array<i32>} : memref<1x4x16x16xf32, #tpu.memory_space<vmem>>, vector<1x4x16x16xf32>,
    return
  }
  func.func @transform_0(%arg0: i32, %arg1: i32) -> (i32, i32, i32, i32) {
    %c0_i32 = arith.constant 0 : i32
    %c0_i32_0 = arith.constant 0 : i32
    %c0_i32_1 = arith.constant 0 : i32
    %c0_i32_2 = arith.constant 0 : i32
    return %arg0, %c0_i32, %c0_i32_0, %c0_i32_1 : i32, i32, i32, i32
  }
  func.func @transform_1(%arg0: i32, %arg1: i32) -> (i32, i32) {
    %c0_i32 = arith.constant 0 : i32
    %c0_i32_0 = arith.constant 0 : i32
    %c0_i32_1 = arith.constant 0 : i32
    return %c0_i32, %c0_i32_0 : i32, i32
  }
  func.func @transform_2(%arg0: i32, %arg1: i32) -> (i32, i32, i32) {
    %c0_i32 = arith.constant 0 : i32
    %c0_i32_0 = arith.constant 0 : i32
    %c0_i32_1 = arith.constant 0 : i32
    %c0_i32_2 = arith.constant 0 : i32
    return %c0_i32, %c0_i32_0, %c0_i32_1 : i32, i32, i32
  }
  func.func @transform_3(%arg0: i32, %arg1: i32) -> (i32, i32) {
    %c0_i32 = arith.constant 0 : i32
    %c0_i32_0 = arith.constant 0 : i32
    %c0_i32_1 = arith.constant 0 : i32
    return %c0_i32, %c0_i32_0 : i32, i32
  }
  func.func @transform_4(%arg0: i32, %arg1: i32) -> (i32, i32) {
    %c0_i32 = arith.constant 0 : i32
    %c0_i32_0 = arith.constant 0 : i32
    %c0_i32_1 = arith.constant 0 : i32
    return %c0_i32, %c0_i32_0 : i32, i32
  }
  func.func @transform_5(%arg0: i32, %arg1: i32) -> (i32, i32) {
    %c0_i32 = arith.constant 0 : i32
    %c0_i32_0 = arith.constant 0 : i32
    %c0_i32_1 = arith.constant 0 : i32
    return %c0_i32, %c0_i32_0 : i32, i32
  }
  func.func @transform_6(%arg0: i32, %arg1: i32) -> (i32, i32) {
    %c0_i32 = arith.constant 0 : i32
    %c0_i32_0 = arith.constant 0 : i32
    %c0_i32_1 = arith.constant 0 : i32
    return %c0_i32, %c0_i32_0 : i32, i32
  }
  func.func @transform_7(%arg0: i32, %arg1: i32) -> (i32, i32) {
    %c0_i32 = arith.constant 0 : i32
    %c0_i32_0 = arith.constant 0 : i32
    %c0_i32_1 = arith.constant 0 : i32
    return %c0_i32, %c0_i32_0 : i32, i32
  }
  func.func @transform_8(%arg0: i32, %arg1: i32) -> (i32, i32) {
    %c0_i32 = arith.constant 0 : i32
    %c0_i32_0 = arith.constant 0 : i32
    %c0_i32_1 = arith.constant 0 : i32
    return %c0_i32, %c0_i32_0 : i32, i32
  }
  func.func @transform_9(%arg0: i32, %arg1: i32) -> (i32, i32) {
    %c0_i32 = arith.constant 0 : i32
    %c0_i32_0 = arith.constant 0 : i32
    %c0_i32_1 = arith.constant 0 : i32
    return %c0_i32, %c0_i32_0 : i32, i32
  }
  func.func @transform_10(%arg0: i32, %arg1: i32) -> (i32, i32, i32, i32) {
    %c0_i32 = arith.constant 0 : i32
    %c0_i32_0 = arith.constant 0 : i32
    %c0_i32_1 = arith.constant 0 : i32
    return %arg0, %arg1, %c0_i32, %c0_i32_0 : i32, i32, i32, i32
  }
}

</mosaic_0001>

<bundles_post_ra>
// kernel: bottleneck_pallas.1
= control target key start
LH: loop header
LB: loop body
LE: loop exit
PB: predicated region body
PF: predicated region fallthrough
CT: control target
= control target key end

     0   :  { %s3164_s13 = smov 0   ;;  %s3166_s14 = smov 0   ;;  %s3854_s0 = inlined_call_operand.vmem [shape: f32[2,18,18,16], index: 0, kind: input, shape index: {}]   ;;  %s3855_s1 = inlined_call_operand.vmem [shape: bf16[16,4], index: 1, kind: input, shape index: {}]   ;;  %s3856_s2 = inlined_call_operand.vmem [shape: bf16[3,12,4], index: 2, kind: input, shape index: {}]   ;;  %s3857_s3 = inlined_call_operand.vmem [shape: bf16[4,16], index: 3, kind: input, shape index: {}]   ;;  %s3858_s4 = inlined_call_operand.vmem [shape: f32[1,4], index: 4, kind: input, shape index: {}]   ;;  %s3859_s5 = inlined_call_operand.vmem [shape: f32[1,4], index: 5, kind: input, shape index: {}]   ;;  %s3860_s6 = inlined_call_operand.vmem [shape: f32[1,4], index: 6, kind: input, shape index: {}]   ;;  %s3861_s7 = inlined_call_operand.vmem [shape: f32[1,4], index: 7, kind: input, shape index: {}]   ;;  %s3862_s8 = inlined_call_operand.vmem [shape: f32[1,16], index: 8, kind: input, shape index: {}]   ;;  %s3863_s9 = inlined_call_operand.vmem [shape: f32[1,16], index: 9, kind: input, shape index: {}]   ;;  %s3864_s10 = inlined_call_operand.vmem [shape: f32[2,16,16,16], index: 10, kind: output, shape index: {}]  }
   0x1   :  { %s3168_s15 = smov 0   ;;  %s3170_s16 = smov 0  }
   0x2   :  { %s3172_s17 = smov 0  }
   0x3 LB: > { %s29_s18 = sadd.s32 1, %s3094_s15  ;;  %s32_s19 = sadd.s32 1, %s3098_s16  ;;  %s3102_s17 = sphi %s3172_s17, %s20_s17   ;;  %s3098_s16 = sphi %s3170_s16, %s3894_s16   ;;  %s3094_s15 = sphi %s3168_s15, %s3893_s15   ;;  %s3090_s14 = sphi %s3166_s14, %s3892_s14   ;;  %s3086_s13 = sphi %s3164_s13, %s3891_s13  }
   0x4   : > { %p30_p0 = scmp.ge.s32.totalorder %s29_s18, 4  ;;  %p2753_p1 = scmp.ge.s32.totalorder %s3102_s17, 1 }
   0x5   : > { %p326_p2 = scmp.lt.s32.totalorder %s3102_s17, 9 }
   0x6   : > { %s3896_s18 = smov (%p30_p0, %s29_s18), 0  ;;  %s3898_s19 = smov (!%p30_p0, %s32_s19), %s3098_s16 }
   0x7   : > { %p327_p3 = pnand %p2753_p1, %p326_p2  ;;  %p34_p4 = scmp.ge.s32.totalorder %s3898_s19, 2 }
   0x8   : > { %p369_p5 = scmp.lt.s32.totalorder (!%p327_p3), %s3090_s14, 1  ;;  %s2760_s22 = smul.u32 (!%p327_p3), 96, %s3086_s13 }
   0x9   : > { %s3900_s19 = smov (%p34_p4, %s3898_s19), 0  ;;  %330 = sbr.rel (%p327_p3) target bundleno = 875 (0x36b), region = 60 }
   0xa   : > { %s3317_s12 = sshll.u32 (!%p327_p3), %s3086_s13, 2  ;;  %s3107_s13 = smov (!%p327_p3), 8  }
   0xb   : > { %s3108_s20 = smov (!%p327_p3), 4   ;;  %p377_p6 = scmp.lt.s32.totalorder (!%p327_p3), %s3317_s12, 15 }
   0xe   : > { %v3024_v0 = vld [vmem:[%s3855_s1] sm:$0xff]   ;;  %v429_v1 = vlaneseq  ;;  %v3104_v2 = vmov 0.0   ;;  %vm3105_vm0 = vmmov 0   ;;  %v3106_v3 = vmov 1983009808   ;;  %s3902_s14 = smov (!%p369_p5, %s3090_s14), 1 }
   0xf   : > { %2904 = vmatprep.subr.bf16.mxu0 %v3104_v2  ;;  %2906 = vmatprep.mubr.msk.bf16.mxu0 %vm3105_vm0, %v3104_v2  ;;  %v427_v4 = vunpack.c.l.s4 %v3106_v3  ;;  %s2978_s23 = smul.u32 432, %s3902_s14  ;;  %vm929_vm1 = vcmask 130048   ;;  %vm1769_vm6 = vcmask 27648   ;;  %vm1772_vm8 = vcmask 24576  }
  0x10   : > { %2905 = vmatpush3.bf16.msra.mxu0 %v3024_v0  ;;  %v3202_v5 = vshrl.u32 %v429_v1, 7 }
  0x11   : > { %v428_v6 = vunpack.c.0.s8 %v427_v4  ;;  %s373_s26 = scalar_lea.vmem %s3854_s0, %s2978_s23 }
  0x12   : > { %s3214_s27 = scalar_lea.vmem %s373_s26, %s2760_s22  ;;  %vm1367_vm4 = vcmp.eq.s32.totalorder %v3202_v5, 0  ;;  %s2757_s22 = sshll.u32 %s3902_s14, 5 }
  0x13   : > { %v3209_v7 = vsub.s32 %v428_v6, %v3202_v5  ;;  %v389_v8 = vld [vmem:[%s3214_s27] sm:$0xff]  ;;  %v390_v9 = vld [vmem:[%s3214_s27 + $0x8] sm:$0xff]  ;;  %v392_v14 = vld [vmem:[%s3214_s27 + $0x18] sm:$0xff] }
  0x14   : > { %v425_v10 = vcombine.high %v389_v8, %v389_v8  ;;  %v442_v12 = vcombine.high %v390_v9, %v390_v9  ;;  %v393_v15 = vld [vmem:[%s3214_s27 + $0x20] sm:$0xff]  ;;  %v466_v16 = vcombine.high %v392_v14, %v392_v14  ;;  %v2761_v24 = vld.sshfl [vmem:[%s3214_s27 + $0x10] sm:$0x3 pattern:$0x76325410]  ;;  %v396_v42 = vld [vmem:[%s3214_s27 + $0x38] sm:$0xff] }
  0x15   : > { %v432_v11 = vrot.slane %v389_v8, %v3209_v7  ;;  %v449_v13 = vrot.slane %v390_v9, %v3209_v7  ;;  %v473_v17 = vrot.slane %v392_v14, %v3209_v7  ;;  %v483_v18 = vcombine.high %v393_v15, %v393_v15  ;;  %v395_v37 = vld [vmem:[%s3214_s27 + $0x30] sm:$0xff]  ;;  %v2762_v52 = vld.sshfl [vmem:[%s3214_s27 + $0x28] sm:$0x3 pattern:$0x76325410] }
  0x16   : > { %v490_v19 = vrot.slane %v393_v15, %v3209_v7  ;;  %v439_v20 = vrot.slane %v425_v10, %v3209_v7  ;;  %v456_v22 = vrot.slane %v442_v12, %v3209_v7  ;;  %v480_v25 = vrot.slane %v466_v16, %v3209_v7  ;;  %v398_v55 = vld [vmem:[%s3214_s27 + $0x48] sm:$0xff]  ;;  %v401_v16 = vld [vmem:[%s3214_s27 + $0x60] sm:$0xff] }
  0x17   : > { %v440_v21 = vcombine.high %v432_v11, %v432_v11  ;;  %v457_v23 = vcombine.high %v449_v13, %v449_v13  ;;  %v481_v26 = vcombine.high %v473_v17, %v473_v17  ;;  %v497_v27 = vrot.slane %v483_v18, %v3209_v7 }
  0x18   : > { %v498_v28 = vcombine.high %v490_v19, %v490_v19  ;;  %v441_v29 = vcombine.high %v439_v20, %v439_v20  ;;  %v458_v30 = vcombine.high %v456_v22, %v456_v22  ;;  %v482_v33 = vcombine.high %v480_v25, %v480_v25 }
  0x19   : > { %v671_v31 = vcombine.low %v432_v11, %v440_v21  ;;  %v688_v32 = vcombine.low %v449_v13, %v457_v23  ;;  %v705_v34 = vcombine.low %v2761_v24, %v473_v17  ;;  %v706_v35 = vcombine.low %v481_v26, %v480_v25  ;;  %v399_v11 = vld [vmem:[%s3214_s27 + $0x50] sm:$0xff]  ;;  %v2763_v17 = vld.sshfl [vmem:[%s3214_s27 + $0x40] sm:$0x3 pattern:$0x76325410] }
  0x1a   : > { %v723_v36 = vcombine.low %v498_v28, %v497_v27  ;;  %v672_v38 = vcombine.low %v439_v20, %v441_v29  ;;  %v689_v40 = vcombine.low %v456_v22, %v458_v30  ;;  %v722_v45 = vcombine.low %v482_v33, %v490_v19 }
  0x1b   : > { %v679_v39 = vrot.slane %v671_v31, %v3209_v7  ;;  %v696_v41 = vrot.slane %v688_v32, %v3209_v7  ;;  %v713_v43 = vrot.slane %v705_v34, %v3209_v7  ;;  %v720_v44 = vrot.slane %v706_v35, %v3209_v7 }
  0x1c   : > { %v686_v46 = vrot.slane %v672_v38, %v3209_v7  ;;  %v703_v47 = vrot.slane %v689_v40, %v3209_v7  ;;  %v499_v48 = vcombine.high %v497_v27, %v497_v27  ;;  %v507_v49 = vcombine.high %v395_v37, %v395_v37 }
  0x1d   : > { %v730_v50 = vrot.slane %v722_v45, %v3209_v7  ;;  %v737_v51 = vrot.slane %v723_v36, %v3209_v7  ;;  %v514_v53 = vrot.slane %v395_v37, %v3209_v7  ;;  %v531_v54 = vrot.slane %v396_v42, %v3209_v7  ;;  %v402_v36 = vld [vmem:[%s3214_s27 + $0x68] sm:$0xff]  ;;  %v2764_v45 = vld.sshfl [vmem:[%s3214_s27 + $0x58] sm:$0x3 pattern:$0x76325410] }
  0x1e   : > { %v687_v56 = vcombine.low %v679_v39, %v686_v46  ;;  %v704_v57 = vcombine.low %v696_v41, %v703_v47  ;;  %v521_v58 = vrot.slane %v507_v49, %v3209_v7  ;;  %v524_v61 = vcombine.high %v396_v42, %v396_v42 }
  0x1f   : > { %v522_v59 = vcombine.high %v514_v53, %v514_v53  ;;  %v539_v60 = vcombine.high %v531_v54, %v531_v54  ;;  %v739_v0 = vcombine.low %v499_v48, %v2762_v52  ;;  %v548_v1 = vcombine.high %v398_v55, %v398_v55  ;;  %v404_v48 = vld [vmem:[%s3214_s27 + $0x78] sm:$0xff] }
  0x20   : > { %v914_v62 = vpack.c.bf16 %v704_v57, %v687_v56  ;;  %v523_v63 = vcombine.high %v521_v58, %v521_v58  ;;  %v721_v3 = vcombine.low %v713_v43, %v720_v44  ;;  %v738_v4 = vcombine.low %v730_v50, %v737_v51 }
  0x21   : > { %v740_v6 = vcombine.low %v514_v53, %v522_v59  ;;  %v538_v8 = vrot.slane %v524_v61, %v3209_v7  ;;  %v757_v10 = vcombine.low %v531_v54, %v539_v60  ;;  %v555_v12 = vrot.slane %v398_v55, %v3209_v7 }
  0x22   : > { %2907 = vmatmul.mubr.msk.bf16.vlgmr.msra.gmra.mxu0 %vm929_vm1, %v914_v62  ;;  %v756_v9 = vcombine.low %v521_v58, %v523_v63  ;;  %v562_v13 = vrot.slane %v548_v1, %v3209_v7  ;;  %v747_v14 = vrot.slane %v739_v0, %v3209_v7  ;;  %v572_v20 = vrot.slane %v399_v11, %v3209_v7  ;;  %v2765_v1 = vld.sshfl [vmem:[%s3214_s27 + $0x70] sm:$0x3 pattern:$0x76325410] }
  0x23   : > { %2910 = vmatprep.mubr.msk.bf16.mxu0 %vm3105_vm0, %v3104_v2  ;;  %v540_v15 = vcombine.high %v538_v8, %v538_v8  ;;  %v563_v18 = vcombine.high %v555_v12, %v555_v12  ;;  %v565_v21 = vcombine.high %v399_v11, %v399_v11  ;;  %v915_v22 = vpack.c.bf16 %v738_v4, %v721_v3 }
  0x24   : > { %v564_v19 = vcombine.high %v562_v13, %v562_v13  ;;  %v754_v23 = vrot.slane %v740_v6, %v3209_v7  ;;  %v764_v24 = vrot.slane %v756_v9, %v3209_v7  ;;  %v771_v25 = vrot.slane %v757_v10, %v3209_v7 }
  0x25   : > { %v589_v26 = vcombine.high %v401_v16, %v401_v16  ;;  %v773_v27 = vcombine.low %v538_v8, %v540_v15  ;;  %v774_v28 = vcombine.low %v2763_v17, %v555_v12  ;;  %v790_v29 = vcombine.low %v563_v18, %v562_v13  ;;  %v405_v8 = vld [vmem:[%s3214_s27 + $0x80] sm:$0xff] }
  0x26   : > { %v791_v30 = vcombine.low %v564_v19, %v572_v20  ;;  %v579_v31 = vrot.slane %v565_v21, %v3209_v7  ;;  %v596_v32 = vrot.slane %v401_v16, %v3209_v7  ;;  %v755_v33 = vcombine.low %v747_v14, %v754_v23 }
  0x27   : > { %v772_v34 = vcombine.low %v764_v24, %v771_v25  ;;  %v603_v35 = vrot.slane %v589_v26, %v3209_v7  ;;  %v781_v37 = vrot.slane %v773_v27, %v3209_v7  ;;  %v788_v38 = vrot.slane %v774_v28, %v3209_v7 }
  0x28   : > { %v580_v39 = vcombine.high %v572_v20, %v572_v20  ;;  %v798_v40 = vrot.slane %v790_v29, %v3209_v7  ;;  %v805_v41 = vrot.slane %v791_v30, %v3209_v7  ;;  %v581_v42 = vcombine.high %v579_v31, %v579_v31  ;;  %v2766_v30 = vld.sshfl [vmem:[%s3214_s27 + $0x88] sm:$0x3 pattern:$0x76325410] }
  0x29   : > { %v604_v43 = vcombine.high %v596_v32, %v596_v32  ;;  %v916_v44 = vpack.c.bf16 %v772_v34, %v755_v33  ;;  %v605_v46 = vcombine.high %v603_v35, %v603_v35  ;;  %v606_v47 = vcombine.high %v402_v36, %v402_v36 }
  0x2a   : > { %2911 = vmatmul.mubr.msk.bf16.gmra.mxu0 %vm929_vm1, %v915_v22  ;;  %v789_v49 = vcombine.low %v781_v37, %v788_v38  ;;  %v807_v50 = vcombine.low %v580_v39, %v579_v31  ;;  %v806_v51 = vcombine.low %v798_v40, %v805_v41  ;;  %v808_v52 = vcombine.low %v581_v42, %v2764_v45  ;;  %v3307_v38 = vld [vmem:[%s3858_s4] ss:$0 sm:$0xff] }
  0x2b   : > { %2914 = vmatprep.mubr.msk.bf16.mxu0 %vm3105_vm0, %v3104_v2  ;;  %v824_v53 = vcombine.low %v596_v32, %v604_v43  ;;  %v613_v54 = vrot.slane %v402_v36, %v3209_v7  ;;  %v825_v55 = vcombine.low %v603_v35, %v605_v46  ;;  %v620_v56 = vrot.slane %v606_v47, %v3209_v7  ;;  %v3312_v40 = vld [vmem:[%s3859_s5] ss:$0 sm:$0xff] }
  0x2c   : > { %v630_v57 = vcombine.high %v404_v48, %v404_v48  ;;  %v637_v58 = vrot.slane %v404_v48, %v3209_v7  ;;  %v815_v59 = vrot.slane %v807_v50, %v3209_v7  ;;  %v917_v60 = vpack.c.bf16 %v806_v51, %v789_v49 }
  0x2d   : > { %v822_v61 = vrot.slane %v808_v52, %v3209_v7  ;;  %v832_v62 = vrot.slane %v824_v53, %v3209_v7  ;;  %v621_v63 = vcombine.high %v613_v54, %v613_v54  ;;  %v839_v0 = vrot.slane %v825_v55, %v3209_v7 }
  0x2e   : > { %v622_v3 = vcombine.high %v620_v56, %v620_v56  ;;  %v644_v4 = vrot.slane %v630_v57, %v3209_v7  ;;  %v645_v6 = vcombine.high %v637_v58, %v637_v58  ;;  %v858_v11 = vcombine.low %v2765_v1, %v637_v58 }
  0x2f   : > { %v823_v9 = vcombine.low %v815_v59, %v822_v61  ;;  %v841_v10 = vcombine.low %v613_v54, %v621_v63  ;;  %v647_v12 = vcombine.high %v405_v8, %v405_v8  ;;  %v840_v13 = vcombine.low %v832_v62, %v839_v0 }
  0x30   : > { %v842_v14 = vcombine.low %v620_v56, %v622_v3  ;;  %v859_v15 = vcombine.low %v645_v6, %v644_v4  ;;  %v654_v16 = vrot.slane %v405_v8, %v3209_v7  ;;  %v866_v18 = vrot.slane %v858_v11, %v3209_v7 }
  0x31   : > { %v849_v17 = vrot.slane %v841_v10, %v3209_v7  ;;  %v646_v19 = vcombine.high %v644_v4, %v644_v4  ;;  %v661_v20 = vrot.slane %v647_v12, %v3209_v7  ;;  %v918_v21 = vpack.c.bf16 %v840_v13, %v823_v9 }
  0x32   : > { %2915 = vmatmul.mubr.msk.bf16.gmra.mxu0 %vm929_vm1, %v916_v44  ;;  %v856_v22 = vrot.slane %v842_v14, %v3209_v7  ;;  %v873_v23 = vrot.slane %v859_v15, %v3209_v7  ;;  %v662_v24 = vcombine.high %v654_v16, %v654_v16  ;;  %v3323_v50 = vstv %s3317_s12  ;;  %s3904_s12 = smov (!%p377_p6, %s3317_s12), 15 }
  0x33   : > { %2918 = vmatprep.mubr.msk.bf16.mxu0 %vm3105_vm0, %v3104_v2  ;;  %v875_v25 = vcombine.low %v646_v19, %v654_v16  ;;  %v663_v28 = vcombine.high %v661_v20, %v661_v20  ;;  %v3326_v52 = vadd.s32 16, %v3202_v5  ;;  %vm1349_vm2 = vcmp.eq.s32.totalorder %v3323_v50, 0  ;;  %s2756_s21 = sshll.u32 %s3904_s12, 1 }
  0x34   : > { %v857_v26 = vcombine.low %v849_v17, %v856_v22  ;;  %v874_v27 = vcombine.low %v866_v18, %v873_v23  ;;  %v876_v29 = vcombine.low %v662_v24, %v661_v20  ;;  %vm1355_vm3 = vcmp.eq.s32.totalorder %v3323_v50, 17  ;;  %s381_s25 = sadd.s32 %s2757_s22, %s2756_s21 }
  0x35   : > { %v883_v32 = vrot.slane %v875_v25, %v3209_v7  ;;  %v892_v34 = vcombine.low %v663_v28, %v2766_v30  ;;  %v3333_v58 = vadd.s32 1, %v3323_v50  ;;  %vm1390_vm5 = vcmp.eq.s32.totalorder %v3326_v52, 17  ;;  %vm3344_vm7 = vmor %vm1349_vm2, %vm1355_vm3  ;;  %s2758_s29 = sshll.u32 %s381_s25, 3 }
  0x36   : > { %v919_v31 = vpack.c.bf16 %v874_v27, %v857_v26  ;;  %v890_v33 = vrot.slane %v876_v29, %v3209_v7  ;;  %vm3358_vm11 = vmor %vm3344_vm7, %vm1367_vm4  ;;  %v3364_v20 = vadd.s32 2, %v3323_v50  ;;  %v3372_v24 = vadd.s32 3, %v3323_v50  ;;  %s3815_s30 = scalar_lea.vmem %s3864_s10, %s2758_s29 }
  0x37   : > { %v899_v36 = vrot.slane %v892_v34, %v3209_v7  ;;  %vm1350_vm9 = vcmp.eq.s32.totalorder %v3333_v58, 0  ;;  %vm1356_vm10 = vcmp.eq.s32.totalorder %v3333_v58, 17  ;;  %vm1393_vm12 = vmor %vm3344_vm7, %vm1390_vm5 }
  0x38   : > { %v891_v35 = vcombine.low %v883_v32, %v890_v33  ;;  %vm1351_vm13 = vcmp.eq.s32.totalorder %v3364_v20, 0  ;;  %vm1357_vm14 = vcmp.eq.s32.totalorder %v3364_v20, 17  ;;  %vm3398_vm15 = vmor %vm1350_vm9, %vm1356_vm10  ;;  %vm1352_vm3 = vcmp.eq.s32.totalorder %v3372_v24, 0 }
  0x39   : > { %vm3424_vm2 = vmor %vm3398_vm15, %vm1390_vm5 }
  0x3a   : > { %2919 = vmatmul.mubr.msk.bf16.gmra.mxu0 %vm929_vm1, %v917_v60  ;;  %v920_v37 = vpack.c.bf16 %v899_v36, %v891_v35  ;;  %vm3444_vm9 = vmor %vm1351_vm13, %vm1357_vm14 }
  0x3b   : > { %2922 = vmatprep.mubr.msk.bf16.mxu0 %vm3105_vm0, %v3104_v2  ;;  %vm1399_vm10 = vmor %vm3444_vm9, %vm1390_vm5 }
  0x42   : > { %2923 = vmatmul.mubr.msk.bf16.gmra.mxu0 %vm929_vm1, %v918_v21 }
  0x43   : > { %2926 = vmatprep.mubr.msk.bf16.mxu0 %vm3105_vm0, %v3104_v2 }
  0x4a   : > { %2927 = vmatmul.mubr.msk.bf16.gmra.mxu0 %vm929_vm1, %v919_v31 }
  0x4b   : > { %2930 = vmatprep.mubr.msk.bf16.mxu0 %vm3105_vm0, %v3104_v2  ;;  %vm3411_vm0 = vmor %vm3398_vm15, %vm1367_vm4 }
  0x52   : > { %2931 = vmatmul.mubr.msk.bf16.gmra.mxu0 %vm929_vm1, %v920_v37 }
  0xe2   : > { %v985_v39 = vpop.f32.mrf.mxu0 }
  0xe3   : > { %v1047_v41 = vmul.f32 %v3307_v38, %v985_v39 }
  0xe4   : > { %v2908_v42 = vpop.f32.mrf.mxu0 }
  0xe5   : > { %v1068_v43 = vadd.f32 %v3312_v40, %v1047_v41 }
  0xe6   : > { %v988_v2 = vpop.f32.mrf.mxu0 }
  0xe7   : > { %v1082_v44 = vmax.f32 %v1068_v43, 0.0  ;;  %v1048_v45 = vmul.f32 %v3307_v38, %v988_v2 }
  0xe8   : > { %v2909_v46 = vpop.f32.mrf.mxu0 }
  0xe9   : > { %v1110_v47 = vcombine.high %v1082_v44, %v1082_v44  ;;  %v1117_v48 = vrot.slane %v1082_v44, %v3209_v7  ;;  %v1069_v49 = vadd.f32 %v3312_v40, %v1048_v45 }
  0xea   : > { %v993_v51 = vpop.f32.mrf.mxu0 }
  0xeb   : > { %v1124_v53 = vrot.slane %v1110_v47, %v3209_v7  ;;  %v1125_v54 = vcombine.high %v1117_v48, %v1117_v48  ;;  %v1083_v55 = vmax.f32 %v1069_v49, 0.0  ;;  %v1049_v56 = vmul.f32 %v3307_v38, %v993_v51 }
  0xec   : > { %v2912_v57 = vpop.f32.mrf.mxu0 }
  0xed   : > { %v1126_v59 = vcombine.high %v1124_v53, %v1124_v53  ;;  %v1409_v60 = vcombine.low %v1117_v48, %v1125_v54  ;;  %v1127_v61 = vcombine.high %v1083_v55, %v1083_v55  ;;  %v1134_v62 = vrot.slane %v1083_v55, %v3209_v7 }
  0xee   : > { %v1070_v63 = vadd.f32 %v3312_v40, %v1049_v56  ;;  %v996_v0 = vpop.f32.mrf.mxu0  ;;  %v3388_v48 = vadd.s32 4, %v3323_v50 }
  0xef   : > { %v1410_v1 = vcombine.low %v1124_v53, %v1126_v59  ;;  %v1141_v3 = vrot.slane %v1127_v61, %v3209_v7  ;;  %v1142_v4 = vcombine.high %v1134_v62, %v1134_v62  ;;  %v1050_v9 = vmul.f32 %v3307_v38, %v996_v0 }
  0xf0   : > { %v1084_v8 = vmax.f32 %v1070_v63, 0.0  ;;  %v2913_v10 = vpop.f32.mrf.mxu0  ;;  %v1417_v11 = vrot.slane %v1409_v60, %v3209_v7  ;;  %vm1353_vm13 = vcmp.eq.s32.totalorder %v3388_v48, 0  ;;  %vm1359_vm14 = vcmp.eq.s32.totalorder %v3388_v48, 17 }
  0xf1   : > { %v1424_v12 = vrot.slane %v1410_v1, %v3209_v7  ;;  %v1143_v13 = vcombine.high %v1141_v3, %v1141_v3  ;;  %v1426_v14 = vcombine.low %v1134_v62, %v1142_v4  ;;  %v1071_v18 = vadd.f32 %v3312_v40, %v1050_v9 }
  0xf2   : > { %v1144_v15 = vcombine.high %v1084_v8, %v1084_v8  ;;  %v1151_v16 = vrot.slane %v1084_v8, %v3209_v7  ;;  %v1001_v19 = vpop.f32.mrf.mxu0  ;;  %v3417_v9 = vadd.s32 5, %v3323_v50 }
  0xf3   : > { %v1425_v21 = vcombine.low %v1417_v11, %v1424_v12  ;;  %v1427_v22 = vcombine.low %v1141_v3, %v1143_v13  ;;  %v1051_v23 = vmul.f32 %v3307_v38, %v1001_v19  ;;  %v1085_v28 = vmax.f32 %v1071_v18, 0.0 }
  0xf4   : > { %v1158_v25 = vrot.slane %v1144_v15, %v3209_v7  ;;  %v1159_v26 = vcombine.high %v1151_v16, %v1151_v16  ;;  %v1449_v27 = vrot.slane %v1151_v16, %v3209_v7  ;;  %v2916_v29 = vpop.f32.mrf.mxu0  ;;  %v1434_v30 = vrot.slane %v1426_v14, %v3209_v7 }
  0xf5   : > { %v1441_v31 = vrot.slane %v1427_v22, %v3209_v7  ;;  %v1673_v32 = vsel %vm3358_vm11, 0.0, %v1425_v21  ;;  %v1072_v33 = vadd.f32 %v3312_v40, %v1051_v23  ;;  %v1161_v43 = vcombine.high %v1085_v28, %v1085_v28  ;;  %vm1376_vm11 = vmor %vm3444_vm9, %vm1367_vm4 }
  0xf6   : > { %v1450_v34 = vcombine.low %v1159_v26, %v1158_v25  ;;  %v1675_v35 = vsel %vm1393_vm12, 0.0, %v1449_v27  ;;  %v2858_v36 = vpack.c.bf16 %v1673_v32, %v1673_v32  ;;  %v1160_v37 = vcombine.high %v1158_v25, %v1158_v25  ;;  %v1004_v39 = vpop.f32.mrf.mxu0 }
  0xf7   : > { %v1442_v41 = vcombine.low %v1434_v30, %v1441_v31  ;;  %v2860_v42 = vpack.c.bf16 %v1675_v35, %v1675_v35  ;;  %v1168_v2 = vrot.slane %v1085_v28, %v3209_v7  ;;  %v1086_v45 = vmax.f32 %v1072_v33, 0.0 }
  0xf8   : > { %v1458_v44 = vrot.slane %v1450_v34, %v3209_v7  ;;  %1770 = vst.msk [vmem:[#allocation2] sm:$0xf] %vm1769_vm6, %v2858_v36  ;;  %v1052_v46 = vmul.f32 %v3307_v38, %v1004_v39  ;;  %v2917_v47 = vpop.f32.mrf.mxu0  ;;  %v1175_v51 = vrot.slane %v1161_v43, %v3209_v7 }
  0xf9   : > { %v1674_v49 = vsel %vm3344_vm7, 0.0, %v1442_v41  ;;  %1773 = vst.msk [vmem:[#allocation2 + $0x8] sm:$0x1] %vm1772_vm8, %v2860_v42  ;;  %v1176_v53 = vcombine.high %v1168_v2, %v1168_v2  ;;  %v1451_v55 = vcombine.low %v1160_v37, %v1168_v2  ;;  %v1178_v57 = vcombine.high %v1086_v45, %v1086_v45 }
  0xfa   : > { %v2859_v56 = vpack.c.bf16 %v1674_v49, %v1674_v49  ;;  %v1185_v59 = vrot.slane %v1086_v45, %v3209_v7  ;;  %v1073_v60 = vadd.f32 %v3312_v40, %v1052_v46  ;;  %v1009_v61 = vpop.f32.mrf.mxu0  ;;  %v1177_v0 = vcombine.high %v1175_v51, %v1175_v51 }
  0xfb   : > { %v1465_v62 = vrot.slane %v1451_v55, %v3209_v7  ;;  %v1467_v63 = vcombine.low %v1176_v53, %v1175_v51  ;;  %v1053_v1 = vmul.f32 %v3307_v38, %v1009_v61  ;;  %v1192_v3 = vrot.slane %v1178_v57, %v3209_v7 }
  0xfc   : > { %1771 = vst.msk [vmem:[#allocation2 + $0x4] sm:$0xf] %vm1769_vm6, %v2859_v56  ;;  %v1193_v4 = vcombine.high %v1185_v59, %v1185_v59  ;;  %v1087_v6 = vmax.f32 %v1073_v60, 0.0  ;;  %v2920_v8 = vpop.f32.mrf.mxu0  ;;  %v1468_v13 = vcombine.low %v1177_v0, %v1185_v59  ;;  %vm1358_vm7 = vcmp.eq.s32.totalorder %v3372_v24, 17 }
  0xfd   : > { %v1466_v10 = vcombine.low %v1458_v44, %v1465_v62  ;;  %v1475_v11 = vrot.slane %v1467_v63, %v3209_v7  ;;  %v1074_v14 = vadd.f32 %v3312_v40, %v1053_v1  ;;  %v1194_v15 = vcombine.high %v1192_v3, %v1192_v3  ;;  %vm3478_vm12 = vmor %vm1352_vm3, %vm1358_vm7 }
  0xfe   : > { %v1490_v16 = vrot.slane %v1193_v4, %v3209_v7  ;;  %v1195_v17 = vcombine.high %v1087_v6, %v1087_v6  ;;  %v1202_v50 = vrot.slane %v1087_v6, %v3209_v7  ;;  %v1012_v18 = vpop.f32.mrf.mxu0  ;;  %v1482_v21 = vrot.slane %v1468_v13, %v3209_v7  ;;  %vm3540_vm3 = vmor %vm1353_vm13, %vm1359_vm14 }
  0xff   : > { %v1676_v19 = vsel %vm3411_vm0, 0.0, %v1466_v10  ;;  %v1088_v22 = vmax.f32 %v1074_v14, 0.0  ;;  %v1054_v23 = vmul.f32 %v3307_v38, %v1012_v18  ;;  %v1491_v26 = vcombine.low %v1192_v3, %v1194_v15  ;;  %vm3498_vm0 = vmor %vm3478_vm12, %vm1367_vm4 }
 0x100   : > { %v2861_v25 = vpack.c.bf16 %v1676_v19, %v1676_v19  ;;  %v1678_v27 = vsel %vm3424_vm2, 0.0, %v1490_v16  ;;  %v1209_v28 = vrot.slane %v1195_v17, %v3209_v7  ;;  %v2921_v29 = vpop.f32.mrf.mxu0  ;;  %v1483_v30 = vcombine.low %v1475_v11, %v1482_v21  ;;  %vm3510_vm2 = vmor %vm3478_vm12, %vm1390_vm5 }
 0x101   : > { %v2863_v31 = vpack.c.bf16 %v1678_v27, %v1678_v27  ;;  %v1210_v32 = vcombine.high %v1202_v50, %v1202_v50  ;;  %v1212_v34 = vcombine.high %v1088_v22, %v1088_v22  ;;  %v1499_v35 = vrot.slane %v1491_v26, %v3209_v7 }
 0x102   : > { %1774 = vst.msk [vmem:[#allocation2 + $0xc] sm:$0xf] %vm1769_vm6, %v2861_v25  ;;  %v1211_v36 = vcombine.high %v1209_v28, %v1209_v28  ;;  %v1219_v37 = vrot.slane %v1088_v22, %v3209_v7  ;;  %v1075_v39 = vadd.f32 %v3312_v40, %v1054_v23  ;;  %v1017_v41 = vpop.f32.mrf.mxu0  ;;  %v1677_v42 = vsel %vm3398_vm15, 0.0, %v1483_v30 }
 0x103   : > { %1776 = vst.msk [vmem:[#allocation2 + $0x14] sm:$0x1] %vm1772_vm8, %v2863_v31  ;;  %v1492_v20 = vcombine.low %v1202_v50, %v1210_v32  ;;  %v1226_v43 = vrot.slane %v1212_v34, %v3209_v7  ;;  %v1055_v2 = vmul.f32 %v3307_v38, %v1017_v41  ;;  %v2862_v44 = vpack.c.bf16 %v1677_v42, %v1677_v42 }
 0x104   : > { %v1508_v45 = vcombine.low %v1209_v28, %v1211_v36  ;;  %v1227_v46 = vcombine.high %v1219_v37, %v1219_v37  ;;  %v1089_v47 = vmax.f32 %v1075_v39, 0.0  ;;  %v2924_v49 = vpop.f32.mrf.mxu0  ;;  %vm1890_vm15 = vcmask 1046528  }
 0x105   : > { %v1506_v51 = vrot.slane %v1492_v20, %v3209_v7  ;;  %v1531_v53 = vrot.slane %v1226_v43, %v3209_v7  ;;  %v1228_v54 = vcombine.high %v1226_v43, %v1226_v43  ;;  %v1076_v55 = vadd.f32 %v3312_v40, %v1055_v2  ;;  %1775 = vst.msk [vmem:[#allocation2 + $0x10] sm:$0xf] %vm1769_vm6, %v2862_v44 }
 0x106   : > { %v1516_v56 = vrot.slane %v1508_v45, %v3209_v7  ;;  %v1509_v57 = vcombine.low %v1219_v37, %v1227_v46  ;;  %v1229_v59 = vcombine.high %v1089_v47, %v1089_v47  ;;  %v1236_v60 = vrot.slane %v1089_v47, %v3209_v7  ;;  %v1020_v61 = vpop.f32.mrf.mxu0 }
 0x107   : > { %v1507_v62 = vcombine.low %v1499_v35, %v1506_v51  ;;  %v1681_v63 = vsel %vm1399_vm10, 0.0, %v1531_v53  ;;  %v1090_v0 = vmax.f32 %v1076_v55, 0.0  ;;  %v1056_v1 = vmul.f32 %v3307_v38, %v1020_v61 }
 0x108   : > { %v1523_v58 = vrot.slane %v1509_v57, %v3209_v7  ;;  %v2866_v3 = vpack.c.bf16 %v1681_v63, %v1681_v63  ;;  %v1243_v4 = vrot.slane %v1229_v59, %v3209_v7  ;;  %v1244_v6 = vcombine.high %v1236_v60, %v1236_v60  ;;  %v2925_v8 = vpop.f32.mrf.mxu0 }
 0x109   : > { %v1679_v10 = vsel %vm1376_vm11, 0.0, %v1507_v62  ;;  %v1532_v12 = vcombine.low %v1228_v54, %v1236_v60  ;;  %v1246_v13 = vcombine.high %v1090_v0, %v1090_v0  ;;  %v1253_v14 = vrot.slane %v1090_v0, %v3209_v7  ;;  %vm3558_vm11 = vmor %vm3540_vm3, %vm1367_vm4 }
 0x10a   : > { %v2864_v15 = vpack.c.bf16 %v1679_v10, %v1679_v10  ;;  %v1524_v16 = vcombine.low %v1516_v56, %v1523_v58  ;;  %1779 = vst.msk [vmem:[#allocation2 + $0x20] sm:$0x1] %vm1772_vm8, %v2866_v3  ;;  %v1533_v17 = vcombine.low %v1244_v6, %v1243_v4  ;;  %v1245_v50 = vcombine.high %v1243_v4, %v1243_v4  ;;  %v1025_v18 = vpop.f32.mrf.mxu0  ;;  %v3486_v24 = vld [vmem:[#allocation2 + $0x14] ss:$0 sps:$4 sm:$0x11]  }
 0x10b   : > { %v1540_v19 = vrot.slane %v1532_v12, %v3209_v7  ;;  %v1260_v21 = vrot.slane %v1246_v13, %v3209_v7  ;;  %v1261_v22 = vcombine.high %v1253_v14, %v1253_v14  ;;  %v1077_v23 = vadd.f32 %v3312_v40, %v1056_v1 }
 0x10c   : > { %1777 = vst.msk [vmem:[#allocation2 + $0x18] sm:$0xf] %vm1769_vm6, %v2864_v15  ;;  %v1680_v25 = vsel %vm3444_vm9, 0.0, %v1524_v16  ;;  %v1547_v27 = vrot.slane %v1533_v17, %v3209_v7  ;;  %v1549_v28 = vcombine.low %v1245_v50, %v1253_v14  ;;  %v1057_v29 = vmul.f32 %v3307_v38, %v1025_v18  ;;  %v2928_v30 = vpop.f32.mrf.mxu0  ;;  %v3504_v33 = vld [vmem:[#allocation2 + $0xc] sm:$0xff]  }
 0x10d   : > { %v2865_v31 = vpack.c.bf16 %v1680_v25, %v1680_v25  ;;  %v1262_v32 = vcombine.high %v1260_v21, %v1260_v21  ;;  %v1550_v34 = vcombine.low %v1261_v22, %v1260_v21  ;;  %v1091_v35 = vmax.f32 %v1077_v23, 0.0 }
 0x10e   : > { %v1548_v36 = vcombine.low %v1540_v19, %v1547_v27  ;;  %v1557_v39 = vrot.slane %v1549_v28, %v3209_v7  ;;  %v1078_v41 = vadd.f32 %v3312_v40, %v1057_v29  ;;  %v1028_v42 = vpop.f32.mrf.mxu0  ;;  %v2033_v20 = vrot.slane %v3486_v24, 1 }
 0x10f   : > { %1778 = vst.msk [vmem:[#allocation2 + $0x1c] sm:$0xf] %vm1769_vm6, %v2865_v31  ;;  %v1564_v43 = vrot.slane %v1550_v34, %v3209_v7  ;;  %v1572_v2 = vrot.slane %v1262_v32, %v3209_v7  ;;  %v1263_v44 = vcombine.high %v1091_v35, %v1091_v35  ;;  %v1270_v45 = vrot.slane %v1091_v35, %v3209_v7 }
 0x110   : > { %v1682_v46 = vsel %vm3498_vm0, 0.0, %v1548_v36  ;;  %v1092_v47 = vmax.f32 %v1078_v41, 0.0  ;;  %v1058_v49 = vmul.f32 %v3307_v38, %v1028_v42  ;;  %v2929_v51 = vpop.f32.mrf.mxu0  ;;  %v2032_v53 = vrot.slane %v3504_v33, 1 }
 0x111   : > { %v2867_v54 = vpack.c.bf16 %v1682_v46, %v1682_v46  ;;  %v1565_v55 = vcombine.low %v1557_v39, %v1564_v43  ;;  %v1684_v56 = vsel %vm3510_vm2, 0.0, %v1572_v2  ;;  %v1277_v57 = vrot.slane %v1263_v44, %v3209_v7  ;;  %v3040_v41 = vld [vmem:[#allocation2 + $0x20] ss:$0 sps:$4 sm:$0x11]  }
 0x112   : > { %v2869_v59 = vpack.c.bf16 %v1684_v56, %v1684_v56  ;;  %v1278_v60 = vcombine.high %v1270_v45, %v1270_v45  ;;  %v1280_v61 = vcombine.high %v1092_v47, %v1092_v47  ;;  %v1287_v62 = vrot.slane %v1092_v47, %v3209_v7  ;;  %v1033_v63 = vpop.f32.mrf.mxu0 }
 0x113   : > { %1780 = vst.msk [vmem:[#allocation2 + $0x24] sm:$0xf] %vm1769_vm6, %v2867_v54  ;;  %v1683_v0 = vsel %vm3478_vm12, 0.0, %v1565_v55  ;;  %v1279_v1 = vcombine.high %v1277_v57, %v1277_v57  ;;  %v1079_v58 = vadd.f32 %v3312_v40, %v1058_v49  ;;  %v2034_v3 = vsel %vm1890_vm15, %v2032_v53, %v2033_v20  ;;  %vm3568_vm12 = vmor %vm3540_vm3, %vm1390_vm5 }
 0x114   : > { %v2868_v4 = vpack.c.bf16 %v1683_v0, %v1683_v0  ;;  %1782 = vst.msk [vmem:[#allocation2 + $0x2c] sm:$0x1] %vm1772_vm8, %v2869_v59  ;;  %v1573_v6 = vcombine.low %v1270_v45, %v1278_v60  ;;  %v1294_v8 = vrot.slane %v1280_v61, %v3209_v7  ;;  %v1295_v10 = vcombine.high %v1287_v62, %v1287_v62  ;;  %v2932_v11 = vpop.f32.mrf.mxu0 }
 0x115   : > { %2044 = vrot.lane.b32.xlu1 %v2034_v3, %s3107_s13  ;;  %vm1354_vm7 = vcmp.eq.s32.totalorder %v3417_v9, 0  ;;  %vm1360_vm9 = vcmp.eq.s32.totalorder %v3417_v9, 17  ;;  %vm1833_vm10 = vsmask.f32 7424  ;;  %v1574_v13 = vcombine.low %v1277_v57, %v1279_v1 }
 0x116   : > { %v1093_v14 = vmax.f32 %v1079_v58, 0.0  ;;  %v1059_v15 = vmul.f32 %v3307_v38, %v1033_v63  ;;  %v1977_v16 = vshrl.u32 %v3504_v33, 16  ;;  %1781 = vst.msk [vmem:[#allocation2 + $0x28] sm:$0xf] %vm1769_vm6, %v2868_v4  ;;  %v1581_v48 = vrot.slane %v1573_v6, %v3209_v7  ;;  %v1036_v19 = vpop.f32.mrf.mxu0  ;;  %v3575_v39 = vld [vmem:[#allocation2 + $0x18] sm:$0xff]   ;;  %vm3600_vm13 = vmor %vm1354_vm7, %vm1360_vm9 }
 0x117   : > { %v1296_v17 = vcombine.high %v1294_v8, %v1294_v8  ;;  %v1590_v50 = vcombine.low %v1287_v62, %v1295_v10  ;;  %v1979_v18 = vshll.u32 %v3504_v33, 16  ;;  %v1588_v21 = vrot.slane %v1574_v13, %v3209_v7  ;;  %vm1385_vm14 = vmor %vm3600_vm13, %vm1367_vm4 }
 0x118   : > { %v1297_v22 = vcombine.high %v1093_v14, %v1093_v14  ;;  %v1304_v23 = vrot.slane %v1093_v14, %v3209_v7  ;;  %v1080_v26 = vadd.f32 %v3312_v40, %v1059_v15  ;;  %v1984_v31 = vshll.u32 %v3486_v24, 16  ;;  %v2933_v32 = vpop.f32.mrf.mxu0  ;;  %vm1408_vm4 = vmor %vm3600_vm13, %vm1390_vm5 }
 0x119   : > { %v1591_v27 = vcombine.low %v1294_v8, %v1296_v17  ;;  %v1598_v28 = vrot.slane %v1590_v50, %v3209_v7  ;;  %v1981_v30 = vrot.slane %v1979_v18, 1  ;;  %v1589_v34 = vcombine.low %v1581_v48, %v1588_v21  ;;  %v3619_v50 = vld [vmem:[#allocation2] sm:$0xff]  }
 0x11a   : > { %v1311_v35 = vrot.slane %v1297_v22, %v3209_v7  ;;  %v1312_v36 = vcombine.high %v1304_v23, %v1304_v23  ;;  %v1613_v37 = vrot.slane %v1304_v23, %v3209_v7  ;;  %v1094_v20 = vmax.f32 %v1080_v26, 0.0 }
 0x11b   : > { %v1605_v42 = vrot.slane %v1591_v27, %v3209_v7  ;;  %v1982_v43 = vor.u32 %v1981_v30, %v1977_v16  ;;  %v1986_v2 = vrot.slane %v1984_v31, 1  ;;  %v1685_v45 = vsel %vm3558_vm11, 0.0, %v1589_v34  ;;  %v3582_v54 = vld [vmem:[#allocation2 + $0x2c] ss:$0 sps:$4 sm:$0x11]  }
 0x11c   : > { %v1614_v44 = vcombine.low %v1312_v36, %v1311_v35  ;;  %v1687_v24 = vsel %vm3568_vm12, 0.0, %v1613_v37  ;;  %v1313_v46 = vcombine.high %v1311_v35, %v1311_v35  ;;  %v2870_v49 = vpack.c.bf16 %v1685_v45, %v1685_v45  ;;  %v3044_v36 = vld [vmem:[#allocation2 + $0x8] ss:$0 sps:$4 sm:$0x11]   ;;  %v3638_v45 = vld [vmem:[#allocation2 + $0x18] sm:$0xff]  }
 0x11d   : > { %v1606_v47 = vcombine.low %v1598_v28, %v1605_v42  ;;  %v2872_v51 = vpack.c.bf16 %v1687_v24, %v1687_v24  ;;  %v1314_v53 = vcombine.high %v1094_v20, %v1094_v20  ;;  %v1321_v55 = vrot.slane %v1094_v20, %v3209_v7  ;;  %v3594_v63 = vld [vmem:[#allocation2 + $0x24] sm:$0xff]   ;;  %v3640_v24 = vld [vmem:[#allocation2 + $0xc] sm:$0xff]  }
 0x11e   : > { %v1987_v56 = vsel %vm1833_vm10, %v1982_v43, %v1986_v2  ;;  %v1060_v57 = vmul.f32 %v3307_v38, %v1036_v19  ;;  %1783 = vst.msk [vmem:[#allocation2 + $0x30] sm:$0xf] %vm1769_vm6, %v2870_v49  ;;  %v2035_v61 = vrot.slane %v3575_v39, 1  ;;  %v2036_v62 = vrot.slane %v3040_v41, 1 }
 0x11f   : > { %v1686_v59 = vsel %vm3540_vm3, 0.0, %v1606_v47  ;;  %1785 = vst.msk [vmem:[#allocation2 + $0x38] sm:$0x1] %vm1772_vm8, %v2872_v51  ;;  %v1328_v60 = vrot.slane %v1314_v53, %v3209_v7  ;;  %2024 = vrot.lane.b32.xlu0 %v1987_v56, %s3108_s20  ;;  %v1329_v1 = vcombine.high %v1321_v55, %v1321_v55  ;;  %v1615_v58 = vcombine.low %v1313_v46, %v1321_v55 }
 0x120   : > { %v2871_v0 = vpack.c.bf16 %v1686_v59, %v1686_v59  ;;  %v1081_v3 = vadd.f32 %v3312_v40, %v1060_v57  ;;  %v1622_v4 = vrot.slane %v1614_v44, %v3209_v7  ;;  %v2037_v8 = vsel %vm1890_vm15, %v2035_v61, %v2036_v62 }
 0x121   : > { %v1330_v6 = vcombine.high %v1328_v60, %v1328_v60  ;;  %v1991_v10 = vshll.u32 %v3575_v39, 16  ;;  %v1629_v12 = vrot.slane %v1615_v58, %v3209_v7  ;;  %v1631_v11 = vcombine.low %v1329_v1, %v1328_v60  ;;  %2046 = vrot.lane.b32.xlu1 %v2037_v8, %s3107_s13  ;;  %v3048_v1 = vld [vmem:[#allocation2 + $0x20] ss:$0 sps:$4 sm:$0x11]  }
 0x122   : > { %1784 = vst.msk [vmem:[#allocation2 + $0x34] sm:$0xf] %vm1769_vm6, %v2871_v0  ;;  %v1095_v9 = vmax.f32 %v1081_v3, 0.0  ;;  %v1996_v13 = vshll.u32 %v3040_v41, 16  ;;  %v1989_v40 = vshrl.u32 %v3575_v39, 16  ;;  %v2003_v15 = vshll.u32 %v3594_v63, 16 }
 0x123   : > { %v1993_v14 = vrot.slane %v1991_v10, 1  ;;  %v2008_v16 = vshll.u32 %v3582_v54, 16  ;;  %v1630_v48 = vcombine.low %v1622_v4, %v1629_v12  ;;  %v2001_v21 = vshrl.u32 %v3594_v63, 16  ;;  %v3050_v0 = vld [vmem:[#allocation2 + $0x14] ss:$0 sps:$4 sm:$0x11]  }
 0x124   : > { %v1337_v17 = vrot.slane %v1095_v9, %v3209_v7  ;;  %v1998_v19 = vrot.slane %v1996_v13, 1  ;;  %v2005_v5 = vrot.slane %v2003_v15, 1  ;;  %v1639_v22 = vrot.slane %v1631_v11, %v3209_v7 }
 0x125   : > { %v1994_v18 = vor.u32 %v1993_v14, %v1989_v40  ;;  %v1688_v23 = vsel %vm1385_vm14, 0.0, %v1630_v48  ;;  %v2010_v30 = vrot.slane %v2008_v16, 1  ;;  %v1837_v35 = vshll.u32 %v3619_v50, 16  ;;  %v3662_v40 = vld [vmem:[#allocation2 + $0x18] sm:$0xff]  }
 0x126   : > { %v1338_v25 = vcombine.high %v1337_v17, %v1337_v17  ;;  %v1632_v26 = vcombine.low %v1330_v6, %v1337_v17  ;;  %v2873_v27 = vpack.c.bf16 %v1688_v23, %v1688_v23  ;;  %v2006_v29 = vor.u32 %v2005_v5, %v2001_v21  ;;  %v3046_v31 = vld [vmem:[#allocation2 + $0x38] ss:$0 sps:$4 sm:$0x11]   ;;  %v3656_v6 = vld [vmem:[#allocation2 + $0x24] sm:$0xff]  }
 0x127   : > { %v1999_v28 = vsel %vm1833_vm10, %v1994_v18, %v1998_v19  ;;  %v2038_v20 = vrot.slane %v3594_v63, 1  ;;  %v1839_v43 = vrot.slane %v1837_v35, 1  ;;  %v2039_v47 = vrot.slane %v3582_v54, 1  ;;  %v3054_v23 = vld [vmem:[#allocation2 + $0x2c] ss:$0 sps:$4 sm:$0x11]  }
 0x128   : > { %v1646_v32 = vrot.slane %v1632_v26, %v3209_v7  ;;  %v1654_v34 = vrot.slane %v1338_v25, %v3209_v7  ;;  %2026 = vrot.lane.b32.xlu0 %v1999_v28, %s3108_s20  ;;  %1786 = vst.msk [vmem:[#allocation2 + $0x3c] sm:$0xf] %vm1769_vm6, %v2873_v27  ;;  %v2011_v52 = vsel %vm1833_vm10, %v2006_v29, %v2010_v30  ;;  %v2020_v7 = vshll.u32 %v3046_v31, 16  ;;  %v3052_v25 = vld [vmem:[#allocation2 + $0x20] ss:$0 sps:$4 sm:$0x11]  }
 0x129   : > { %v3634_v37 = vld [vmem:[#allocation2 + $0x30] sm:$0xff]   ;;  %v1835_v49 = vshrl.u32 %v3619_v50, 16  ;;  %v1842_v53 = vshll.u32 %v3044_v36, 16  ;;  %v2040_v57 = vsel %vm1890_vm15, %v2038_v20, %v2039_v47  ;;  %v1861_v62 = vshll.u32 %v3638_v45, 16  ;;  %v3674_v30 = vld [vmem:[#allocation2 + $0x24] sm:$0xff]  }
 0x12a   : > { %v1647_v41 = vcombine.low %v1639_v22, %v1646_v32  ;;  %v1690_v42 = vsel %vm1408_vm4, 0.0, %v1654_v34  ;;  %v2015_v44 = vshll.u32 %v3634_v37, 16  ;;  %v2013_v55 = vshrl.u32 %v3634_v37, 16  ;;  %v3058_v47 = vld [vmem:[#allocation2 + $0x2c] ss:$0 sps:$4 sm:$0x11]  }
 0x12b   : > { %v2875_v2 = vpack.c.bf16 %v1690_v42, %v1690_v42  ;;  %v1840_v59 = vor.u32 %v1839_v43, %v1835_v49  ;;  %v2022_v61 = vrot.slane %v2020_v7, 1  ;;  %v1849_v54 = vshll.u32 %v3640_v24, 16 }
 0x12c   : > { %v1689_v46 = vsel %vm3600_vm13, 0.0, %v1647_v41  ;;  %2028 = vrot.lane.b32.xlu0 %v2011_v52, %s3108_s20  ;;  %v2017_v56 = vrot.slane %v2015_v44, 1  ;;  %v1844_v38 = vrot.slane %v1842_v53, 1  ;;  %v2041_v3 = vrot.slane %v3634_v37, 1  ;;  %v3680_v41 = vld [vmem:[#allocation2 + $0x30] sm:$0xff]  }
 0x12d   : > { %v2874_v51 = vpack.c.bf16 %v1689_v46, %v1689_v46  ;;  %1788 = vst.msk [vmem:[#allocation2 + $0x44] sm:$0x1] %vm1772_vm8, %v2875_v2  ;;  %v1851_v4 = vrot.slane %v1849_v54, 1  ;;  %v1891_v8 = vrot.slane %v3619_v50, 1  ;;  %v2042_v10 = vrot.slane %v3046_v31, 1 }
 0x12e   : > { %v2018_v60 = vor.u32 %v2017_v56, %v2013_v55  ;;  %v1845_v12 = vsel %vm1833_vm10, %v1840_v59, %v1844_v38  ;;  %v1863_v11 = vrot.slane %v1861_v62, 1  ;;  %v1847_v9 = vshrl.u32 %v3640_v24, 16  ;;  %v3061_v46 = vld [vmem:[%s3856_s2 + $0x8] sm:$0x3f]   ;;  %v3695_v56 = vld [vmem:[%s3856_s2] sm:$0x3f]  }
 0x12f   : > { %1787 = vst.msk [vmem:[#allocation2 + $0x40] sm:$0xf] %vm1769_vm6, %v2874_v51  ;;  %v1854_v13 = vshll.u32 %v3050_v0, 16  ;;  %v1892_v14 = vrot.slane %v3044_v36, 1  ;;  %v1859_v15 = vshrl.u32 %v3638_v45, 16  ;;  %v2043_v16 = vsel %vm1890_vm15, %v2041_v3, %v2042_v10 }
 0x130   : > { %2048 = vrot.lane.b32.xlu0 %v2040_v57, %s3107_s13  ;;  %v2023_v58 = vsel %vm1833_vm10, %v2018_v60, %v2022_v61  ;;  %v1866_v48 = vshll.u32 %v3048_v1, 16  ;;  %v1852_v17 = vor.u32 %v1851_v4, %v1847_v9  ;;  %v1873_v18 = vshll.u32 %v3656_v6, 16  ;;  %v3056_v59 = vld [vmem:[#allocation2 + $0x38] ss:$0 sps:$4 sm:$0x11]  }
 0x131   : > { %2030 = vrot.lane.b32.xlu1 %v2023_v58, %s3108_s20  ;;  %v1893_v19 = vsel %vm1890_vm15, %v1891_v8, %v1892_v14  ;;  %v1864_v21 = vor.u32 %v1863_v11, %v1859_v15  ;;  %v1856_v5 = vrot.slane %v1854_v13, 1  ;;  %v2283_v22 = vshll.u32 %v3662_v40, 16 }
 0x132   : > { %v1868_v26 = vrot.slane %v1866_v48, 1  ;;  %v1894_v28 = vrot.slane %v3640_v24, 1  ;;  %v1875_v29 = vrot.slane %v1873_v18, 1  ;;  %v1897_v31 = vrot.slane %v3638_v45, 1 }
 0x133   : > { %v1857_v27 = vsel %vm1833_vm10, %v1852_v17, %v1856_v5  ;;  %v1895_v32 = vrot.slane %v3050_v0, 1  ;;  %v2285_v35 = vrot.slane %v2283_v22, 1  ;;  %v1871_v52 = vshrl.u32 %v3656_v6, 16 }
 0x134   : > { %1882 = vrot.lane.b32.xlu0 %v1845_v12, %s3108_s20  ;;  %v1869_v34 = vsel %vm1833_vm10, %v1864_v21, %v1868_v26  ;;  %v1878_v36 = vshll.u32 %v3054_v23, 16  ;;  %v1898_v42 = vrot.slane %v3048_v1, 1  ;;  %v2288_v20 = vshll.u32 %v3052_v25, 16  ;;  %v3060_v17 = vld [vmem:[#allocation2 + $0x44] ss:$0 sps:$4 sm:$0x11]  }
 0x135   : > { %2050 = vrot.lane.b32.xlu1 %v2043_v16, %s3107_s13  ;;  %v1896_v43 = vsel %vm1890_vm15, %v1894_v28, %v1895_v32  ;;  %v2281_v2 = vshrl.u32 %v3662_v40, 16  ;;  %v1876_v44 = vor.u32 %v1875_v29, %v1871_v52  ;;  %v2295_v7 = vshll.u32 %v3674_v30, 16 }
 0x136   : > { %v1899_v49 = vsel %vm1890_vm15, %v1897_v31, %v1898_v42  ;;  %v1880_v53 = vrot.slane %v1878_v36, 1  ;;  %v2307_v55 = vshll.u32 %v3680_v41, 16  ;;  %v2290_v57 = vrot.slane %v2288_v20, 1  ;;  %v3700_v0 = vld [vmem:[#allocation2 + $0x3c] sm:$0xff]  }
 0x137   : > { %v2286_v51 = vor.u32 %v2285_v35, %v2281_v2  ;;  %vm2085_vm5 = vcmask 1045504   ;;  %v1900_v61 = vrot.slane %v3656_v6, 1  ;;  %v2297_v62 = vrot.slane %v2295_v7, 1 }
 0x138   : > { %1903 = vrot.lane.b32.xlu0 %v1893_v19, %s3107_s13  ;;  %v1881_v60 = vsel %vm1833_vm10, %v1876_v44, %v1880_v53  ;;  %2974 = vmatprep.subr.msk.bf16.mxu1 %vm2085_vm5, %v3061_v46  ;;  %v2087_v54 = vsel %vm2085_vm5, %v3061_v46, 0  ;;  %v2336_v1 = vrot.slane %v3662_v40, 1  ;;  %v1901_v38 = vrot.slane %v3054_v23, 1 }
 0x139   : > { %1884 = vrot.lane.b32.xlu1 %v1857_v27, %s3108_s20  ;;  %2935 = vmatpush3.bf16.msra.mxu1 %v2087_v54  ;;  %v2291_v58 = vsel %vm1833_vm10, %v2286_v51, %v2290_v57  ;;  %v2309_v3 = vrot.slane %v2307_v55, 1  ;;  %v2293_v4 = vshrl.u32 %v3674_v30, 16  ;;  %v2300_v8 = vshll.u32 %v3058_v47, 16  ;;  %v3063_v51 = vld [vmem:[%s3856_s2 + $0x10] sm:$0x3f]  }
 0x13a   : > { %2975 = vmatprep.subr.msk.bf16.mxu1 %vm2085_vm5, %v3695_v56  ;;  %v2337_v10 = vrot.slane %v3052_v25, 1  ;;  %v2312_v12 = vshll.u32 %v3056_v59, 16  ;;  %v1902_v11 = vsel %vm1890_vm15, %v1900_v61, %v1901_v38  ;;  %v2305_v9 = vshrl.u32 %v3680_v41, 16 }
 0x13b   : > { %v2298_v13 = vor.u32 %v2297_v62, %v2293_v4  ;;  %v2319_v14 = vshll.u32 %v3700_v0, 16  ;;  %v2302_v48 = vrot.slane %v2300_v8, 1  ;;  %v2339_v21 = vrot.slane %v3674_v30, 1 }
 0x13c   : > { %1886 = vrot.lane.b32.xlu0 %v1869_v34, %s3108_s20  ;;  %v2338_v15 = vsel %vm1890_vm15, %v2336_v1, %v2337_v10  ;;  %v2310_v16 = vor.u32 %v2309_v3, %v2305_v9  ;;  %v2314_v18 = vrot.slane %v2312_v12, 1  ;;  %v2324_v22 = vshll.u32 %v3060_v17, 16 }
 0x13d   : > { %1905 = vrot.lane.b32.xlu1 %v1896_v43, %s3107_s13  ;;  %v2303_v19 = vsel %vm1833_vm10, %v2298_v13, %v2302_v48  ;;  %v2321_v5 = vrot.slane %v2319_v14, 1  ;;  %v2342_v25 = vrot.slane %v3680_v41, 1  ;;  %v2340_v26 = vrot.slane %v3058_v47, 1 }
 0x13e   : > { %v2315_v23 = vsel %vm1833_vm10, %v2310_v16, %v2314_v18  ;;  %v2317_v27 = vshrl.u32 %v3700_v0, 16  ;;  %v2343_v28 = vrot.slane %v3056_v59, 1  ;;  %v2326_v32 = vrot.slane %v2324_v22, 1 }
 0x13f   : > { %v2341_v29 = vsel %vm1890_vm15, %v2339_v21, %v2340_v26  ;;  %v2345_v52 = vrot.slane %v3700_v0, 1  ;;  %v2346_v36 = vrot.slane %v3060_v17, 1  ;;  %vm1911_vm6 = vcmask 31744  }
 0x140   : > { %1907 = vrot.lane.b32.xlu0 %v1899_v49, %s3107_s13  ;;  %v2322_v31 = vor.u32 %v2321_v5, %v2317_v27  ;;  %v2344_v34 = vsel %vm1890_vm15, %v2342_v25, %v2343_v28  ;;  %vm1920_vm8 = vcmask 64512   ;;  %vm2076_vm0 = vcmask 97280  }
 0x141   : > { %1888 = vrot.lane.b32.xlu1 %v1881_v60, %s3108_s20  ;;  %v2347_v42 = vsel %vm1890_vm15, %v2345_v52, %v2346_v36  ;;  %v2168_v49 = vsel %vm2085_vm5, %v3695_v56, 0  ;;  %vm2519_vm15 = vcmask 1041408  }
 0x142   : > { %v2327_v35 = vsel %vm1833_vm10, %v2322_v31, %v2326_v32 }
 0x144   : > { %2328 = vrot.lane.b32.xlu0 %v2291_v58, %s3108_s20 }
 0x145   : > { %1909 = vrot.lane.b32.xlu1 %v1902_v11, %s3107_s13 }
 0x148   : > { %2348 = vrot.lane.b32.xlu0 %v2338_v15, %s3107_s13 }
 0x149   : > { %2330 = vrot.lane.b32.xlu1 %v2303_v19, %s3108_s20 }
 0x14c   : > { %2332 = vrot.lane.b32.xlu0 %v2315_v23, %s3108_s20 }
 0x14d   : > { %2350 = vrot.lane.b32.xlu1 %v2341_v29, %s3107_s13 }
 0x150   : > { %2352 = vrot.lane.b32.xlu0 %v2344_v34, %s3107_s13 }
 0x151   : > { %2334 = vrot.lane.b32.xlu1 %v2327_v35, %s3108_s20 }
 0x155   : > { %2354 = vrot.lane.b32.xlu1 %v2347_v42, %s3107_s13 }
 0x187   : > { %v2045_v43 = vpop.permute.xlu1 %2044 }
 0x191   : > { %v2025_v20 = vpop.permute.xlu0 %2024 }
 0x192   : > { %v2053_v2 = vsel %vm1911_vm6, %v3504_v33, %v2025_v20 }
 0x193   : > { %v2061_v44 = vsel %vm1920_vm8, %v2053_v2, %v2045_v43  ;;  %v2047_v46 = vpop.permute.xlu1 %2046 }
 0x194   : > { %2936 = vmatprep.mubr.msk.bf16.mxu1 %vm2076_vm0, %v2061_v44 }
 0x19a   : > { %v2027_v7 = vpop.permute.xlu0 %2026 }
 0x19b   : > { %v2055_v47 = vsel %vm1911_vm6, %v3575_v39, %v2027_v7 }
 0x19c   : > { %v2063_v53 = vsel %vm1920_vm8, %v2055_v47, %v2047_v46 }
 0x19d   : > { %2937 = vmatmul.mubr.msk.bf16.vlgmr.msra.gmra.mxu1 %vm2076_vm0, %v2063_v53 }
 0x19e   : > { %v2029_v33 = vpop.permute.xlu0 %2028  ;;  %2945 = vmatpush3.bf16.msra.mxu1 %v2168_v49 }
 0x19f   : > { %2976 = vmatprep.subr.msk.bf16.mxu1 %vm2085_vm5, %v3063_v51  ;;  %v2057_v55 = vsel %vm1911_vm6, %v3594_v63, %v2029_v33 }
 0x1a2   : > { %v2049_v57 = vpop.permute.xlu0 %2048 }
 0x1a3   : > { %v2065_v39 = vsel %vm1920_vm8, %v2057_v55, %v2049_v57  ;;  %v2031_v56 = vpop.permute.xlu1 %2030  ;;  %v2838_v55 = vld [vmem:[%s3860_s6] ss:$0 sm:$0xff] }
 0x1a4   : > { %2940 = vmatprep.mubr.msk.bf16.mxu1 %vm2076_vm0, %v2065_v39  ;;  %v2059_v60 = vsel %vm1911_vm6, %v3634_v37, %v2031_v56  ;;  %v2389_v37 = vsel %vm2085_vm5, %v3063_v51, 0 }
 0x1a6   : > { %v1883_v59 = vpop.permute.xlu0 %1882 }
 0x1a7   : > { %v2051_v61 = vpop.permute.xlu1 %2050  ;;  %v1913_v54 = vsel %vm1911_vm6, %v3619_v50, %v1883_v59 }
 0x1a8   : > { %v2067_v62 = vsel %vm1920_vm8, %v2059_v60, %v2051_v61 }
 0x1a9   : > { %2941 = vmatmul.mubr.msk.bf16.gmra.mxu1 %vm2076_vm0, %v2067_v62 }
 0x1aa   : > { %v1904_v1 = vpop.permute.xlu0 %1903 }
 0x1ab   : > { %v1922_v63 = vsel %vm1920_vm8, %v1913_v54, %v1904_v1  ;;  %v1885_v38 = vpop.permute.xlu1 %1884  ;;  %v2839_v54 = vld [vmem:[%s3861_s7] ss:$0 sm:$0xff] }
 0x1ac   : > { %2946 = vmatprep.mubr.msk.bf16.mxu1 %vm2076_vm0, %v1922_v63  ;;  %v1915_v3 = vsel %vm1911_vm6, %v3640_v24, %v1885_v38 }
 0x1ae   : > { %v1887_v58 = vpop.permute.xlu0 %1886 }
 0x1af   : > { %v1906_v4 = vpop.permute.xlu1 %1905  ;;  %v1917_v50 = vsel %vm1911_vm6, %v3638_v45, %v1887_v58 }
 0x1b0   : > { %v1924_v8 = vsel %vm1920_vm8, %v1915_v3, %v1906_v4 }
 0x1b1   : > { %2947 = vmatmul.mubr.msk.bf16.vlgmr.msra.gmra.mxu1 %vm2076_vm0, %v1924_v8 }
 0x1b2   : > { %v1908_v10 = vpop.permute.xlu0 %1907  ;;  %2955 = vmatpush3.bf16.msra.mxu1 %v2389_v37 }
 0x1b3   : > { %v1926_v12 = vsel %vm1920_vm8, %v1917_v50, %v1908_v10  ;;  %v1889_v11 = vpop.permute.xlu1 %1888 }
 0x1b4   : > { %2950 = vmatprep.mubr.msk.bf16.mxu1 %vm2076_vm0, %v1926_v12  ;;  %v1919_v24 = vsel %vm1911_vm6, %v3656_v6, %v1889_v11 }
 0x1b6   : > { %v2329_v9 = vpop.permute.xlu0 %2328 }
 0x1b7   : > { %v1910_v13 = vpop.permute.xlu1 %1909  ;;  %v2357_v15 = vsel %vm1911_vm6, %v3662_v40, %v2329_v9 }
 0x1b8   : > { %v1928_v14 = vsel %vm1920_vm8, %v1919_v24, %v1910_v13 }
 0x1b9   : > { %2951 = vmatmul.mubr.msk.bf16.gmra.mxu1 %vm2076_vm0, %v1928_v14 }
 0x1ba   : > { %v2349_v45 = vpop.permute.xlu0 %2348 }
 0x1bb   : > { %v2365_v16 = vsel %vm1920_vm8, %v2357_v15, %v2349_v45  ;;  %v2331_v48 = vpop.permute.xlu1 %2330 }
 0x1bc   : > { %2956 = vmatprep.mubr.msk.bf16.mxu1 %vm2076_vm0, %v2365_v16  ;;  %v2359_v18 = vsel %vm1911_vm6, %v3674_v30, %v2331_v48 }
 0x1be   : > { %v2333_v17 = vpop.permute.xlu0 %2332 }
 0x1bf   : > { %v2351_v19 = vpop.permute.xlu1 %2350  ;;  %v2361_v21 = vsel %vm1911_vm6, %v3680_v41, %v2333_v17  ;;  %v2506_v41 = vld [vmem:[%s3857_s3] sm:$0x3] }
 0x1c0   : > { %v2367_v6 = vsel %vm1920_vm8, %v2359_v18, %v2351_v19  ;;  %2977 = vmatprep.subr.msk.bf16.mxu1 %vm2519_vm15, %v2506_v41  ;;  %v2521_v26 = vsel %vm2519_vm15, %v2506_v41, 0 }
 0x1c1   : > { %2957 = vmatmul.mubr.msk.bf16.vlgmr.msra.gmra.mxu1 %vm2076_vm0, %v2367_v6 }
 0x1c2   : > { %v2353_v5 = vpop.permute.xlu0 %2352  ;;  %2965 = vmatpush3.bf16.msra.mxu1 %v2521_v26 }
 0x1c3   : > { %v2369_v40 = vsel %vm1920_vm8, %v2361_v21, %v2353_v5  ;;  %v2335_v22 = vpop.permute.xlu1 %2334 }
 0x1c4   : > { %2960 = vmatprep.mubr.msk.bf16.mxu1 %vm2076_vm0, %v2369_v40  ;;  %v2363_v23 = vsel %vm1911_vm6, %v3700_v0, %v2335_v22 }
 0x1c7   : > { %v2355_v25 = vpop.permute.xlu1 %2354 }
 0x1c8   : > { %v2371_v30 = vsel %vm1920_vm8, %v2363_v23, %v2355_v25 }
 0x1c9   : > { %2961 = vmatmul.mubr.msk.bf16.gmra.mxu1 %vm2076_vm0, %v2371_v30 }
 0x25d   : > { %v2938_v27 = vpop.f32.mrf.mxu1 }
 0x25f   : > { %v2123_v28 = vpop.f32.mrf.mxu1 }
 0x261   : > { %v2939_v29 = vpop.f32.mrf.mxu1 }
 0x263   : > { %v2126_v31 = vpop.f32.mrf.mxu1 }
 0x269   : > { %v2942_v32 = vpop.f32.mrf.mxu1 }
 0x26b   : > { %v2139_v34 = vpop.f32.mrf.mxu1 }
 0x26d   : > { %v2943_v0 = vpop.f32.mrf.mxu1 }
 0x26f   : > { %v2142_v35 = vpop.f32.mrf.mxu1 }
 0x271   : > { %v2948_v52 = vpop.f32.mrf.mxu1 }
 0x272   : > { %v2213_v46 = vadd.f32 %v2948_v52, %v2938_v27  ;;  %v2845_v52 = vld [vmem:[%s3863_s9] ss:$0 sm:$0xff] }
 0x273   : > { %v2204_v36 = vpop.f32.mrf.mxu1 }
 0x274   : > { %v2205_v49 = vadd.f32 %v2204_v36, %v2123_v28 }
 0x275   : > { %v2949_v42 = vpop.f32.mrf.mxu1 }
 0x276   : > { %v2216_v33 = vadd.f32 %v2949_v42, %v2939_v29  ;;  %v2850_v42 = vld [vmem:[%s3214_s27 + $0x31] sm:$0xff] }
 0x277   : > { %v2207_v20 = vpop.f32.mrf.mxu1 }
 0x278   : > { %v2208_v56 = vadd.f32 %v2207_v20, %v2126_v31 }
 0x279   : > { %v2952_v43 = vpop.f32.mrf.mxu1 }
 0x27a   : > { %v2229_v38 = vadd.f32 %v2952_v43, %v2942_v32 }
 0x27b   : > { %v2220_v2 = vpop.f32.mrf.mxu1 }
 0x27c   : > { %v2221_v3 = vadd.f32 %v2220_v2, %v2139_v34 }
 0x27d   : > { %v2953_v44 = vpop.f32.mrf.mxu1 }
 0x27e   : > { %v2232_v24 = vadd.f32 %v2953_v44, %v2943_v0  ;;  %v2844_v0 = vld [vmem:[%s3862_s8] ss:$0 sm:$0xff] }
 0x27f   : > { %v2223_v7 = vpop.f32.mrf.mxu1  ;;  %v2848_v44 = vld [vmem:[%s3214_s27 + $0x19] sm:$0xff] }
 0x280   : > { %v2224_v15 = vadd.f32 %v2223_v7, %v2142_v35 }
 0x281   : > { %v2958_v47 = vpop.f32.mrf.mxu1 }
 0x282   : > { %v2458_v51 = vadd.f32 %v2958_v47, %v2213_v46 }
 0x283   : > { %v2425_v53 = vpop.f32.mrf.mxu1 }
 0x284   : > { %v2456_v57 = vadd.f32 %v2425_v53, %v2205_v49  ;;  %v2473_v61 = vmul.f32 %v2838_v55, %v2458_v51  ;;  %v2851_v51 = vld [vmem:[%s3214_s27 + $0x39] sm:$0xff] }
 0x285   : > { %v2959_v39 = vpop.f32.mrf.mxu1 }
 0x286   : > { %v2471_v59 = vmul.f32 %v2838_v55, %v2456_v57  ;;  %v2459_v60 = vadd.f32 %v2959_v39, %v2216_v33  ;;  %v2488_v50 = vadd.f32 %v2839_v54, %v2473_v61 }
 0x287   : > { %v2428_v62 = vpop.f32.mrf.mxu1 }
 0x288   : > { %v2474_v1 = vmul.f32 %v2838_v55, %v2459_v60  ;;  %v2457_v63 = vadd.f32 %v2428_v62, %v2208_v56  ;;  %v2486_v4 = vadd.f32 %v2839_v54, %v2471_v59  ;;  %v2496_v17 = vmax.f32 %v2488_v50, 0.0  ;;  %v2849_v56 = vld [vmem:[%s3214_s27 + $0x21] sm:$0xff] }
 0x289   : > { %v2962_v58 = vpop.f32.mrf.mxu1 }
 0x28a   : > { %v2489_v37 = vadd.f32 %v2839_v54, %v2474_v1  ;;  %v2472_v8 = vmul.f32 %v2838_v55, %v2457_v63  ;;  %v2462_v10 = vadd.f32 %v2962_v58, %v2229_v38  ;;  %v2494_v45 = vmax.f32 %v2486_v4, 0.0  ;;  %v2854_v1 = vld [vmem:[%s3214_s27 + $0x61] sm:$0xff] }
 0x28b   : > { %v2441_v12 = vpop.f32.mrf.mxu1 }
 0x28c   : > { %v2487_v11 = vadd.f32 %v2839_v54, %v2472_v8  ;;  %v2460_v9 = vadd.f32 %v2441_v12, %v2221_v3  ;;  %v2497_v13 = vmax.f32 %v2489_v37, 0.0  ;;  %v2477_v18 = vmul.f32 %v2838_v55, %v2462_v10  ;;  %v2852_v37 = vld [vmem:[%s3214_s27 + $0x49] sm:$0xff] }
 0x28d   : > { %v2963_v14 = vpop.f32.mrf.mxu1 }
 0x28e   : > { %v2495_v16 = vmax.f32 %v2487_v11, 0.0  ;;  %v2475_v48 = vmul.f32 %v2838_v55, %v2460_v9  ;;  %v2463_v19 = vadd.f32 %v2963_v14, %v2232_v24  ;;  %v2503_v40 = vpack.c.bf16 %v2497_v13, %v2496_v17  ;;  %v2855_v9 = vld [vmem:[%s3214_s27 + $0x69] sm:$0xff] }
 0x28f   : > { %v2444_v6 = vpop.f32.mrf.mxu1  ;;  %v2492_v30 = vadd.f32 %v2839_v54, %v2477_v18 }
 0x290   : > { %v2502_v21 = vpack.c.bf16 %v2495_v16, %v2494_v45  ;;  %v2461_v5 = vadd.f32 %v2444_v6, %v2224_v15  ;;  %v2478_v22 = vmul.f32 %v2838_v55, %v2463_v19  ;;  %v2490_v23 = vadd.f32 %v2839_v54, %v2475_v48  ;;  %v2853_v16 = vld [vmem:[%s3214_s27 + $0x51] sm:$0xff] }
 0x291   : > { %v2500_v31 = vmax.f32 %v2492_v30, 0.0 }
 0x292   : > { %v2476_v25 = vmul.f32 %v2838_v55, %v2461_v5  ;;  %2966 = vmatprep.mubr.msk.bf16.mxu1 %vm1911_vm6, %v2502_v21  ;;  %v2493_v41 = vadd.f32 %v2839_v54, %v2478_v22  ;;  %v2498_v28 = vmax.f32 %v2490_v23, 0.0 }
 0x293   : > { %2967 = vmatmul.mubr.msk.bf16.vlgmr.msra.gmra.mxu1 %vm1911_vm6, %v2503_v40 }
 0x294   : > { %v2491_v26 = vadd.f32 %v2839_v54, %v2476_v25  ;;  %v2501_v27 = vmax.f32 %v2493_v41, 0.0 }
 0x296   : > { %v2499_v29 = vmax.f32 %v2491_v26, 0.0  ;;  %v2505_v34 = vpack.c.bf16 %v2501_v27, %v2500_v31 }
 0x298   : > { %v2504_v32 = vpack.c.bf16 %v2499_v29, %v2498_v28 }
 0x29a   : > { %2970 = vmatprep.mubr.msk.bf16.mxu1 %vm1911_vm6, %v2504_v32 }
 0x29b   : > { %2971 = vmatmul.mubr.msk.bf16.gmra.mxu1 %vm1911_vm6, %v2505_v34 }
 0x353   : > { %v2968_v35 = vpop.f32.mrf.mxu1 }
 0x354   : > { %v2597_v36 = vmul.f32 %v2968_v35, %v2844_v0 }
 0x355   : > { %v2557_v20 = vpop.f32.mrf.mxu1 }
 0x356   : > { %v2612_v43 = vadd.f32 %v2845_v52, %v2597_v36  ;;  %v2595_v2 = vmul.f32 %v2844_v0, %v2557_v20 }
 0x357   : > { %v2969_v7 = vpop.f32.mrf.mxu1 }
 0x358   : > { %v2631_v46 = vadd.f32 %v2850_v42, %v2612_v43  ;;  %v2610_v47 = vadd.f32 %v2845_v52, %v2595_v2  ;;  %v2598_v49 = vmul.f32 %v2969_v7, %v2844_v0 }
 0x359   : > { %v2560_v53 = vpop.f32.mrf.mxu1 }
 0x35a   : > { %v2639_v33 = vmax.f32 %v2631_v46, 0.0  ;;  %v2629_v55 = vadd.f32 %v2848_v44, %v2610_v47  ;;  %v2613_v57 = vadd.f32 %v2845_v52, %v2598_v49  ;;  %v2596_v39 = vmul.f32 %v2844_v0, %v2560_v53 }
 0x35b   : > { %v2972_v59 = vpop.f32.mrf.mxu1 }
 0x35c   : > { %2647 = vst.msk [vmem:[%s3815_s30 + $0x10] sm:$0xff] %vm929_vm1, %v2639_v33  ;;  %v2637_v60 = vmax.f32 %v2629_v55, 0.0  ;;  %v2632_v61 = vadd.f32 %v2851_v51, %v2613_v57  ;;  %v2611_v62 = vadd.f32 %v2845_v52, %v2596_v39  ;;  %v2601_v54 = vmul.f32 %v2972_v59, %v2844_v0 }
 0x35d   : > { %v2573_v63 = vpop.f32.mrf.mxu1 }
 0x35e   : > { %2645 = vst.msk [vmem:[%s3815_s30] sm:$0xff] %vm929_vm1, %v2637_v60  ;;  %v2640_v38 = vmax.f32 %v2632_v61, 0.0  ;;  %v2630_v58 = vadd.f32 %v2849_v56, %v2611_v62  ;;  %v2616_v3 = vadd.f32 %v2845_v52, %v2601_v54  ;;  %v2599_v4 = vmul.f32 %v2844_v0, %v2573_v63 }
 0x35f   : > { %v2973_v8 = vpop.f32.mrf.mxu1 }
 0x360   : > { %2648 = vst.msk [vmem:[%s3815_s30 + $0x18] sm:$0xff] %vm929_vm1, %v2640_v38  ;;  %v2638_v50 = vmax.f32 %v2630_v58, 0.0  ;;  %v2635_v10 = vadd.f32 %v2854_v1, %v2616_v3  ;;  %v2614_v12 = vadd.f32 %v2845_v52, %v2599_v4  ;;  %v2602_v11 = vmul.f32 %v2973_v8, %v2844_v0 }
 0x361   : > { %v2576_v24 = vpop.f32.mrf.mxu1 }
 0x362   : > { %2646 = vst.msk [vmem:[%s3815_s30 + $0x8] sm:$0xff] %vm929_vm1, %v2638_v50  ;;  %v2643_v13 = vmax.f32 %v2635_v10, 0.0  ;;  %v2633_v14 = vadd.f32 %v2852_v37, %v2614_v12  ;;  %v2617_v15 = vadd.f32 %v2845_v52, %v2602_v11  ;;  %v2600_v45 = vmul.f32 %v2844_v0, %v2576_v24 }
 0x364   : > { %2651 = vst.msk [vmem:[%s3815_s30 + $0x30] sm:$0xff] %vm929_vm1, %v2643_v13  ;;  %v2641_v48 = vmax.f32 %v2633_v14, 0.0  ;;  %v2636_v17 = vadd.f32 %v2855_v9, %v2617_v15  ;;  %v2615_v18 = vadd.f32 %v2845_v52, %v2600_v45 }
 0x366   : > { %2649 = vst.msk [vmem:[%s3815_s30 + $0x20] sm:$0xff] %vm929_vm1, %v2641_v48  ;;  %v2644_v19 = vmax.f32 %v2636_v17, 0.0  ;;  %v2634_v6 = vadd.f32 %v2853_v16, %v2615_v18 }
 0x368   : > { %2652 = vst.msk [vmem:[%s3815_s30 + $0x38] sm:$0xff] %vm929_vm1, %v2644_v19  ;;  %v2642_v21 = vmax.f32 %v2634_v6, 0.0 }
 0x36a   : > { %2650 = vst.msk [vmem:[%s3815_s30 + $0x28] sm:$0xff] %vm929_vm1, %v2642_v21 }
 0x36b PF: > { %s20_s17 = sadd.s32 1, %s3102_s17   ;;  %s3891_s13 = smov %s3094_s15 }
 0x36c   : > { %p17_p7 = scmp.ge.s32.totalorder %s20_s17, 10   ;;  %s3892_s14 = smov %s3098_s16 }
 0x36d   : > { %s3893_s15 = smov %s3896_s18  ;;  %s3894_s16 = smov %s3900_s19 }
 0x36e   :  { %19 = sbr.rel (!%p17_p7) target bundleno = 3 (0x3), region = 96 }

</bundles_post_ra>
